<compile_context>
chip_gen: v7x
topology: tpu7x:2x2x1
jax: 0.10.0
libtpu: 0.0.40
codegen_flags: <defaults>
</compile_context>

<pallas_src>
import jax
import jax.numpy as jnp
from jax.experimental import pallas as pl
from jax.experimental.pallas import tpu as pltpu


# Layer sizes of the PyTorch module.
LAYER_DIMS = [8, 256, 256, 256, 128, 64, 2]
LANE = 128      # pad the narrow fc5/fc6 dims up to one full lane group
TB_MIN = 256    # minimum batch tile (sublane-aligned, MXU-friendly M)
TB_MAX = 2048   # cap so the largest tile still fits v5e's scoped VMEM


def mlp_kernel(x_ref,
               w12_ref, b12_ref,
               w3_ref, b3_ref,
               w4_ref, b4_ref,
               w5_ref, b5_ref,
               w6_ref, b6_ref,
               o_ref):
    """One batch tile of the folded MLP, weights fully resident in VMEM.

    Matmul inputs are bf16 with f32 accumulation; bias-add and ReLU run in
    f32; activations are carried between layers as bf16.
    """

    def layer(h, w_ref, b_ref, relu):
        acc = jnp.dot(h, w_ref[...], preferred_element_type=jnp.float32)
        acc = acc + b_ref[...]
        if relu:
            return jnp.maximum(acc, 0.0).astype(jnp.bfloat16)
        return acc

    h = x_ref[...].astype(jnp.bfloat16)
    # fc1 folded into fc2 (no activation between them in the original module).
    h = layer(h, w12_ref, b12_ref, relu=True)    # relu(fc2(fc1(x)))  (TB, 256)
    h = layer(h, w3_ref, b3_ref, relu=True)      # relu(fc3)          (TB, 256)
    h = layer(h, w4_ref, b4_ref, relu=True)      # relu(fc4)          (TB, 128)
    h = layer(h, w5_ref, b5_ref, relu=True)      # relu(fc5), padded  (TB, 128)
    out = layer(h, w6_ref, b6_ref, relu=False)   # fc6, padded        (TB, 128)
    # Full 128-lane unmasked store; columns 2..127 are exactly zero by
    # construction of the padded fc6 weights/bias.
    o_ref[...] = out.astype(o_ref.dtype)


def init_params(key):
    """PyTorch-Linear-style uniform init; weights in (in, out) layout."""
    params = []
    for i in range(len(LAYER_DIMS) - 1):
        fan_in, fan_out = LAYER_DIMS[i], LAYER_DIMS[i + 1]
        key, kw, kb = jax.random.split(key, 3)
        bound = 1.0 / jnp.sqrt(fan_in)
        w = jax.random.uniform(kw, (fan_in, fan_out), jnp.float32,
                               minval=-bound, maxval=bound)
        b = jax.random.uniform(kb, (1, fan_out), jnp.float32,
                               minval=-bound, maxval=bound)
        params += [w, b]
    return params


def prepare_params(params):
    """Fold fc1 into fc2, pad fc5/fc6 to 128 lanes, cast weights to bf16.

    Returns [w12, b12, w3, b3, w4, b4, w5p, b5p, w6p, b6p].
    """
    w1, b1, w2, b2 = params[0], params[1], params[2], params[3]
    w3, b3 = params[4], params[5]
    w4, b4 = params[6], params[7]
    w5, b5 = params[8], params[9]
    w6, b6 = params[10], params[11]

    # Linear(8,256) composed with Linear(256,256), no intervening nonlinearity.
    w12 = w1 @ w2                       # (8, 256)   f32 precompute
    b12 = b1 @ w2 + b2                  # (1, 256)

    # Zero-pad fc5 outputs / fc6 inputs+outputs to a full 128 lanes so the
    # last two matmuls and the final store are lane-dense. Padded fc5 columns
    # are relu(0 + 0) = 0 and only hit zero rows/cols of the padded fc6, so
    # output columns 2..127 are exactly zero and get sliced off in the wrapper.
    d5_in, d5_out, d_out = LAYER_DIMS[4], LAYER_DIMS[5], LAYER_DIMS[6]
    w5p = jnp.zeros((d5_in, LANE), jnp.float32).at[:, :d5_out].set(w5)
    b5p = jnp.zeros((1, LANE), jnp.float32).at[:, :d5_out].set(b5)
    w6p = jnp.zeros((LANE, LANE), jnp.float32).at[:d5_out, :d_out].set(w6)
    b6p = jnp.zeros((1, LANE), jnp.float32).at[:, :d_out].set(b6)

    def wb(w, b):
        return [w.astype(jnp.bfloat16), b.astype(jnp.float32)]

    return wb(w12, b12) + wb(w3, b3) + wb(w4, b4) + wb(w5p, b5p) + wb(w6p, b6p)


def _choose_tiling(batch):
    """Pick (tile, padded_batch): tile is a multiple of TB_MIN, <= TB_MAX,
    and (when the batch allows) the grid has an even number of steps >= 2 so
    both v7x TensorCores get work under dimension_semantics=("parallel",)."""
    units = pl.cdiv(batch, TB_MIN)                    # number of 256-row chunks
    steps = max(2, pl.cdiv(units * TB_MIN, TB_MAX))   # >=2 steps, tile <= TB_MAX
    steps = min(units, steps)
    if steps > 1 and steps % 2 == 1:
        steps += 1                                    # balanced split across 2 TCs
    tb = pl.cdiv(units, steps) * TB_MIN
    return tb, steps * tb


@jax.jit
def net_forward(x, *fused_params):
    batch, in_features = x.shape
    tb, padded = _choose_tiling(batch)

    # Pad the batch up to the tiled extent; padded rows are sliced off below.
    if padded != batch:
        x = jnp.pad(x, ((0, padded - batch), (0, 0)))
    grid = (padded // tb,)

    # x / out are tiled over the batch; every weight/bias keeps a constant
    # block index so it is DMA'd once and stays resident in VMEM.
    x_spec = pl.BlockSpec((tb, in_features), lambda i: (i, 0))
    out_spec = pl.BlockSpec((tb, LANE), lambda i: (i, 0))
    resident_specs = [pl.BlockSpec(p.shape, lambda i: (0, 0))
                      for p in fused_params]

    out = pl.pallas_call(
        mlp_kernel,
        out_shape=jax.ShapeDtypeStruct((padded, LANE), jnp.float32),
        grid_spec=pltpu.PrefetchScalarGridSpec(
            num_scalar_prefetch=0,
            grid=grid,
            in_specs=[x_spec] + resident_specs,
            out_specs=out_spec,
        ),
        compiler_params=pltpu.CompilerParams(
            dimension_semantics=("parallel",),
            # TB can reach 2048 rows; lift v5e's 16 MiB default scoped-VMEM
            # budget (matches the default on v6e/v7x, well under physical).
            vmem_limit_bytes=32 * 1024 * 1024,
        ),
    )(x, *fused_params)
    # Drop batch padding and the lane padding around the 2 real logits.
    return out[:batch, :LAYER_DIMS[-1]]


def reference_forward_f32(x, params):
    """Original (unfused, f32) forward — the PyTorch module's semantics."""
    h = x
    acts = [None, jax.nn.relu, jax.nn.relu, jax.nn.relu, jax.nn.relu, None]
    for i, act in enumerate(acts):
        w, b = params[2 * i], params[2 * i + 1]
        h = h @ w + b
        if act is not None:
            h = act(h)
    return h


def reference_forward_fused(x, fused_params):
    """Pure-JAX emulation of the exact kernel math (folded, padded, bf16)."""
    h = x.astype(jnp.bfloat16)
    n_layers = len(fused_params) // 2
    for i in range(n_layers):
        w, b = fused_params[2 * i], fused_params[2 * i + 1]
        acc = jnp.dot(h, w, preferred_element_type=jnp.float32) + b
        if i < n_layers - 1:
            h = jnp.maximum(acc, 0.0).astype(jnp.bfloat16)
        else:
            h = acc
    return h[:, :LAYER_DIMS[-1]]


if __name__ == "__main__":
    key = jax.random.PRNGKey(0)
    key, kx = jax.random.split(key)

    batch = 512                        # small demo shape: 2 grid steps at TB=256
    x = jax.random.normal(kx, (batch, LAYER_DIMS[0]), jnp.float32)

    params = init_params(key)
    fused = prepare_params(params)

    out = jax.block_until_ready(net_forward(x, *fused))
    assert out.shape == (batch, LAYER_DIMS[-1])

    # Tight check: kernel vs pure-JAX emulation of the same folded/bf16 math.
    ref_fused = reference_forward_fused(x, fused)
    assert jnp.allclose(out, ref_fused, atol=1e-2, rtol=1e-2), \
        "mismatch vs fused bf16 reference"
    # Looser check: kernel vs original unfused f32 module semantics
    # (folding + bf16 weights/activations change rounding slightly).
    ref_f32 = reference_forward_f32(x, params)
    assert jnp.allclose(out, ref_f32, atol=5e-2, rtol=5e-2), \
        "mismatch vs f32 reference"

    print("KERNEL_OK")
</pallas_src>

<mosaic_0001>
module attributes {stable_mosaic.version = 11 : i64} {
  func.func @mlp_kernel(%arg0: i32, %arg1: memref<256x8xf32, #tpu.memory_space<vmem>>, %arg2: memref<8x256xbf16, #tpu.memory_space<vmem>>, %arg3: memref<1x256xf32, #tpu.memory_space<vmem>>, %arg4: memref<256x256xbf16, #tpu.memory_space<vmem>>, %arg5: memref<1x256xf32, #tpu.memory_space<vmem>>, %arg6: memref<256x128xbf16, #tpu.memory_space<vmem>>, %arg7: memref<1x128xf32, #tpu.memory_space<vmem>>, %arg8: memref<128x128xbf16, #tpu.memory_space<vmem>>, %arg9: memref<1x128xf32, #tpu.memory_space<vmem>>, %arg10: memref<128x128xbf16, #tpu.memory_space<vmem>>, %arg11: memref<1x128xf32, #tpu.memory_space<vmem>>, %arg12: memref<256x128xf32, #tpu.memory_space<vmem>>) attributes {dimension_semantics = [#tpu.dimension_semantics<parallel>], iteration_bounds = array<i64: 2>, scalar_prefetch = 0 : i64, scratch_operands = 0 : i64, tpu.core_type = #tpu.core_type<tc>, window_params = [{transform_indices = @transform_0, window_bounds = array<i64: 256, 8>}, {pipeline_mode = #tpu.pipeline_mode<synchronous>, transform_indices = @transform_1, window_bounds = array<i64: 8, 256>}, {pipeline_mode = #tpu.pipeline_mode<synchronous>, transform_indices = @transform_2, window_bounds = array<i64: 1, 256>}, {pipeline_mode = #tpu.pipeline_mode<synchronous>, transform_indices = @transform_3, window_bounds = array<i64: 256, 256>}, {pipeline_mode = #tpu.pipeline_mode<synchronous>, transform_indices = @transform_4, window_bounds = array<i64: 1, 256>}, {pipeline_mode = #tpu.pipeline_mode<synchronous>, transform_indices = @transform_5, window_bounds = array<i64: 256, 128>}, {pipeline_mode = #tpu.pipeline_mode<synchronous>, transform_indices = @transform_6, window_bounds = array<i64: 1, 128>}, {pipeline_mode = #tpu.pipeline_mode<synchronous>, transform_indices = @transform_7, window_bounds = array<i64: 128, 128>}, {pipeline_mode = #tpu.pipeline_mode<synchronous>, transform_indices = @transform_8, window_bounds = array<i64: 1, 128>}, {pipeline_mode = #tpu.pipeline_mode<synchronous>, transform_indices = @transform_9, window_bounds = array<i64: 128, 128>}, {pipeline_mode = #tpu.pipeline_mode<synchronous>, transform_indices = @transform_10, window_bounds = array<i64: 1, 128>}, {transform_indices = @transform_11, window_bounds = array<i64: 256, 128>}]} {
    %c0 = arith.constant 0 : index
    %c0_0 = arith.constant 0 : index
    %0 = vector.load %arg1[%c0, %c0_0] : memref<256x8xf32, #tpu.memory_space<vmem>>, vector<256x8xf32>
    %1 = arith.truncf %0 : vector<256x8xf32> to vector<256x8xbf16>
    %c0_1 = arith.constant 0 : index
    %c0_2 = arith.constant 0 : index
    %2 = vector.load %arg2[%c0_1, %c0_2] : memref<8x256xbf16, #tpu.memory_space<vmem>>, vector<8x256xbf16>
    %cst = arith.constant dense<0.000000e+00> : vector<256x256xf32>
    %3 = tpu.matmul %1, %2, %cst {dimension_numbers = #tpu.dot_dimension_numbers<[1], [0], [0], [1], [0, 0, 1, 1], [], []>} : vector<256x8xbf16>, vector<8x256xbf16>, vector<256x256xf32> -> vector<256x256xf32>
    %c0_3 = arith.constant 0 : index
    %c0_4 = arith.constant 0 : index
    %4 = vector.load %arg3[%c0_3, %c0_4] : memref<1x256xf32, #tpu.memory_space<vmem>>, vector<1x256xf32>
    %5 = vector.broadcast %4 : vector<1x256xf32> to vector<256x256xf32>
    %6 = arith.addf %3, %5 : vector<256x256xf32>
    %cst_5 = arith.constant 0.000000e+00 : f32
    %7 = vector.broadcast %cst_5 : f32 to vector<256x256xf32>
    %8 = arith.maximumf %6, %7 : vector<256x256xf32>
    %9 = arith.truncf %8 : vector<256x256xf32> to vector<256x256xbf16>
    %c0_6 = arith.constant 0 : index
    %c0_7 = arith.constant 0 : index
    %10 = vector.load %arg4[%c0_6, %c0_7] : memref<256x256xbf16, #tpu.memory_space<vmem>>, vector<256x256xbf16>
    %cst_8 = arith.constant dense<0.000000e+00> : vector<256x256xf32>
    %11 = tpu.matmul %9, %10, %cst_8 {dimension_numbers = #tpu.dot_dimension_numbers<[1], [0], [0], [1], [0, 0, 1, 1], [], []>} : vector<256x256xbf16>, vector<256x256xbf16>, vector<256x256xf32> -> vector<256x256xf32>
    %c0_9 = arith.constant 0 : index
    %c0_10 = arith.constant 0 : index
    %12 = vector.load %arg5[%c0_9, %c0_10] : memref<1x256xf32, #tpu.memory_space<vmem>>, vector<1x256xf32>
    %13 = vector.broadcast %12 : vector<1x256xf32> to vector<256x256xf32>
    %14 = arith.addf %11, %13 : vector<256x256xf32>
    %cst_11 = arith.constant 0.000000e+00 : f32
    %15 = vector.broadcast %cst_11 : f32 to vector<256x256xf32>
    %16 = arith.maximumf %14, %15 : vector<256x256xf32>
    %17 = arith.truncf %16 : vector<256x256xf32> to vector<256x256xbf16>
    %c0_12 = arith.constant 0 : index
    %c0_13 = arith.constant 0 : index
    %18 = vector.load %arg6[%c0_12, %c0_13] : memref<256x128xbf16, #tpu.memory_space<vmem>>, vector<256x128xbf16>
    %cst_14 = arith.constant dense<0.000000e+00> : vector<256x128xf32>
    %19 = tpu.matmul %17, %18, %cst_14 {dimension_numbers = #tpu.dot_dimension_numbers<[1], [0], [0], [1], [0, 0, 1, 1], [], []>} : vector<256x256xbf16>, vector<256x128xbf16>, vector<256x128xf32> -> vector<256x128xf32>
    %c0_15 = arith.constant 0 : index
    %c0_16 = arith.constant 0 : index
    %20 = vector.load %arg7[%c0_15, %c0_16] : memref<1x128xf32, #tpu.memory_space<vmem>>, vector<1x128xf32>
    %21 = vector.broadcast %20 : vector<1x128xf32> to vector<256x128xf32>
    %22 = arith.addf %19, %21 : vector<256x128xf32>
    %cst_17 = arith.constant 0.000000e+00 : f32
    %23 = vector.broadcast %cst_17 : f32 to vector<256x128xf32>
    %24 = arith.maximumf %22, %23 : vector<256x128xf32>
    %25 = arith.truncf %24 : vector<256x128xf32> to vector<256x128xbf16>
    %c0_18 = arith.constant 0 : index
    %c0_19 = arith.constant 0 : index
    %26 = vector.load %arg8[%c0_18, %c0_19] : memref<128x128xbf16, #tpu.memory_space<vmem>>, vector<128x128xbf16>
    %cst_20 = arith.constant dense<0.000000e+00> : vector<256x128xf32>
    %27 = tpu.matmul %25, %26, %cst_20 {dimension_numbers = #tpu.dot_dimension_numbers<[1], [0], [0], [1], [0, 0, 1, 1], [], []>} : vector<256x128xbf16>, vector<128x128xbf16>, vector<256x128xf32> -> vector<256x128xf32>
    %c0_21 = arith.constant 0 : index
    %c0_22 = arith.constant 0 : index
    %28 = vector.load %arg9[%c0_21, %c0_22] : memref<1x128xf32, #tpu.memory_space<vmem>>, vector<1x128xf32>
    %29 = vector.broadcast %28 : vector<1x128xf32> to vector<256x128xf32>
    %30 = arith.addf %27, %29 : vector<256x128xf32>
    %cst_23 = arith.constant 0.000000e+00 : f32
    %31 = vector.broadcast %cst_23 : f32 to vector<256x128xf32>
    %32 = arith.maximumf %30, %31 : vector<256x128xf32>
    %33 = arith.truncf %32 : vector<256x128xf32> to vector<256x128xbf16>
    %c0_24 = arith.constant 0 : index
    %c0_25 = arith.constant 0 : index
    %34 = vector.load %arg10[%c0_24, %c0_25] : memref<128x128xbf16, #tpu.memory_space<vmem>>, vector<128x128xbf16>
    %cst_26 = arith.constant dense<0.000000e+00> : vector<256x128xf32>
    %35 = tpu.matmul %33, %34, %cst_26 {dimension_numbers = #tpu.dot_dimension_numbers<[1], [0], [0], [1], [0, 0, 1, 1], [], []>} : vector<256x128xbf16>, vector<128x128xbf16>, vector<256x128xf32> -> vector<256x128xf32>
    %c0_27 = arith.constant 0 : index
    %c0_28 = arith.constant 0 : index
    %36 = vector.load %arg11[%c0_27, %c0_28] : memref<1x128xf32, #tpu.memory_space<vmem>>, vector<1x128xf32>
    %37 = vector.broadcast %36 : vector<1x128xf32> to vector<256x128xf32>
    %38 = arith.addf %35, %37 : vector<256x128xf32>
    %c0_29 = arith.constant 0 : index
    %c0_30 = arith.constant 0 : index
    %39 = vector.load %arg12[%c0_29, %c0_30] : memref<256x128xf32, #tpu.memory_space<vmem>>, vector<256x128xf32>
    tpu.vector_store %arg12[%c0_29, %c0_30], %38 {strides = array<i32>} : memref<256x128xf32, #tpu.memory_space<vmem>>, vector<256x128xf32>,
    return
  }
  func.func @transform_0(%arg0: i32) -> (i32, i32) {
    %c0_i32 = arith.constant 0 : i32
    %c0_i32_0 = arith.constant 0 : i32
    return %arg0, %c0_i32 : i32, i32
  }
  func.func @transform_1(%arg0: i32) -> (i32, i32) {
    %c0_i32 = arith.constant 0 : i32
    %c0_i32_0 = arith.constant 0 : i32
    %c0_i32_1 = arith.constant 0 : i32
    return %c0_i32, %c0_i32_0 : i32, i32
  }
  func.func @transform_2(%arg0: i32) -> (i32, i32) {
    %c0_i32 = arith.constant 0 : i32
    %c0_i32_0 = arith.constant 0 : i32
    %c0_i32_1 = arith.constant 0 : i32
    return %c0_i32, %c0_i32_0 : i32, i32
  }
  func.func @transform_3(%arg0: i32) -> (i32, i32) {
    %c0_i32 = arith.constant 0 : i32
    %c0_i32_0 = arith.constant 0 : i32
    %c0_i32_1 = arith.constant 0 : i32
    return %c0_i32, %c0_i32_0 : i32, i32
  }
  func.func @transform_4(%arg0: i32) -> (i32, i32) {
    %c0_i32 = arith.constant 0 : i32
    %c0_i32_0 = arith.constant 0 : i32
    %c0_i32_1 = arith.constant 0 : i32
    return %c0_i32, %c0_i32_0 : i32, i32
  }
  func.func @transform_5(%arg0: i32) -> (i32, i32) {
    %c0_i32 = arith.constant 0 : i32
    %c0_i32_0 = arith.constant 0 : i32
    %c0_i32_1 = arith.constant 0 : i32
    return %c0_i32, %c0_i32_0 : i32, i32
  }
  func.func @transform_6(%arg0: i32) -> (i32, i32) {
    %c0_i32 = arith.constant 0 : i32
    %c0_i32_0 = arith.constant 0 : i32
    %c0_i32_1 = arith.constant 0 : i32
    return %c0_i32, %c0_i32_0 : i32, i32
  }
  func.func @transform_7(%arg0: i32) -> (i32, i32) {
    %c0_i32 = arith.constant 0 : i32
    %c0_i32_0 = arith.constant 0 : i32
    %c0_i32_1 = arith.constant 0 : i32
    return %c0_i32, %c0_i32_0 : i32, i32
  }
  func.func @transform_8(%arg0: i32) -> (i32, i32) {
    %c0_i32 = arith.constant 0 : i32
    %c0_i32_0 = arith.constant 0 : i32
    %c0_i32_1 = arith.constant 0 : i32
    return %c0_i32, %c0_i32_0 : i32, i32
  }
  func.func @transform_9(%arg0: i32) -> (i32, i32) {
    %c0_i32 = arith.constant 0 : i32
    %c0_i32_0 = arith.constant 0 : i32
    %c0_i32_1 = arith.constant 0 : i32
    return %c0_i32, %c0_i32_0 : i32, i32
  }
  func.func @transform_10(%arg0: i32) -> (i32, i32) {
    %c0_i32 = arith.constant 0 : i32
    %c0_i32_0 = arith.constant 0 : i32
    %c0_i32_1 = arith.constant 0 : i32
    return %c0_i32, %c0_i32_0 : i32, i32
  }
  func.func @transform_11(%arg0: i32) -> (i32, i32) {
    %c0_i32 = arith.constant 0 : i32
    %c0_i32_0 = arith.constant 0 : i32
    return %arg0, %c0_i32 : i32, i32
  }
}

</mosaic_0001>

<bundles_post_ra>
// kernel: net_forward.1
= control target key start
LH: loop header
LB: loop body
LE: loop exit
PB: predicated region body
PF: predicated region fallthrough
CT: control target
= control target key end

     0   :  { %s2768_s17 = smov 0   ;;  %s3356_s0 = inlined_call_operand.vmem [shape: f32[512,8], index: 0, kind: input, shape index: {}]   ;;  %s3357_s1 = inlined_call_operand.vmem [shape: bf16[8,256], index: 1, kind: input, shape index: {}]   ;;  %s3358_s2 = inlined_call_operand.vmem [shape: f32[1,256], index: 2, kind: input, shape index: {}]   ;;  %s3359_s3 = inlined_call_operand.vmem [shape: bf16[256,256], index: 3, kind: input, shape index: {}]   ;;  %s3360_s4 = inlined_call_operand.vmem [shape: f32[1,256], index: 4, kind: input, shape index: {}]   ;;  %s3361_s5 = inlined_call_operand.vmem [shape: bf16[256,128], index: 5, kind: input, shape index: {}]   ;;  %s3362_s6 = inlined_call_operand.vmem [shape: f32[1,128], index: 6, kind: input, shape index: {}]   ;;  %s3363_s7 = inlined_call_operand.vmem [shape: bf16[128,128], index: 7, kind: input, shape index: {}]   ;;  %s3364_s8 = inlined_call_operand.vmem [shape: f32[1,128], index: 8, kind: input, shape index: {}]   ;;  %s3365_s9 = inlined_call_operand.vmem [shape: bf16[128,128], index: 9, kind: input, shape index: {}]   ;;  %s3366_s10 = inlined_call_operand.vmem [shape: f32[1,128], index: 10, kind: input, shape index: {}]   ;;  %s3367_s11 = inlined_call_operand.vmem [shape: f32[512,128], index: 11, kind: output, shape index: {}]  }
   0x1 LB: > { %s2239_s18 = sadd.s32 4294967295, %s2705_s17   ;;  %p2243_p0 = scmp.ge.s32.totalorder %s2705_s17, 1  ;;  %s2705_s17 = sphi %s2768_s17, %s21_s17  }
   0x2   : > { %p338_p1 = scmp.lt.s32.totalorder %s2705_s17, 3 }
   0x4   : > { %p339_p2 = pnand %p2243_p0, %p338_p1 }
   0x5   : > { %v439_v0 = vld [vmem:[%s3357_s1] sm:$0xff] (!%p339_p2)  ;;  %vm506_vm0 = vcmask (!%p339_p2), 1043456   ;;  %s2244_s21 = sshll.u32 (!%p339_p2), %s2239_s18, 5  ;;  %v2707_v3 = vmov (!%p339_p2), 0   ;;  %v2622_v6 = vld [vmem:[%s3359_s3 + $0x14] ss:$8 sps:$4 sm:$0xff] (!%p339_p2)  }
   0x6   : > { %342 = sbr.rel (%p339_p2) target bundleno = 1246 (0x4de), region = 64  ;;  %v2249_v1 = vcombine.high (!%p339_p2), %v439_v0, %v439_v0  ;;  %v2248_v2 = vcombine.low (!%p339_p2), %v439_v0, %v439_v0  ;;  %545 = vmatprep.mubr.bf16.mxu0 (!%p339_p2), %v2707_v3  ;;  %p379_p3 = scmp.lt.s32.totalorder (!%p339_p2), %s2244_s21, 63  ;;  %v2619_v4 = vld [vmem:[%s3359_s3 + $0x4] ss:$8 sps:$4 sm:$0xff] (!%p339_p2)   ;;  %v2621_v5 = vld [vmem:[%s3359_s3] ss:$8 sps:$4 sm:$0xff] (!%p339_p2)  }
   0x7   : > { %1006 = vmatprep.subr.bf16.mxu1 (!%p339_p2), %v2619_v4  ;;  %v2624_v8 = vld [vmem:[%s3359_s3 + $0x10] ss:$8 sps:$4 sm:$0xff] (!%p339_p2)   ;;  %v2625_v9 = vld [vmem:[%s3359_s3 + $0x24] ss:$8 sps:$4 sm:$0xff] (!%p339_p2)   ;;  %vm457_vm1 = vcmask (!%p339_p2), 64512  }
   0x8   : > { %2250 = vmatprep.subr.msk.bf16.mxu0 (!%p339_p2), %vm506_vm0, %v2249_v1  ;;  %v508_v7 = vsel (!%p339_p2), %vm506_vm0, %v2248_v2, 0  ;;  %1007 = vmatpush1.bf16.msra.mxu1 (!%p339_p2), %v2621_v5  ;;  %v2627_v13 = vld [vmem:[%s3359_s3 + $0x20] ss:$8 sps:$4 sm:$0xff] (!%p339_p2)   ;;  %v2628_v14 = vld [vmem:[%s3359_s3 + $0x34] ss:$8 sps:$4 sm:$0xff] (!%p339_p2)  }
   0x9   : > { %514 = vmatpush1.bf16.msra.mxu0 (!%p339_p2), %v508_v7  ;;  %1008 = vmatprep.subr.bf16.mxu1 (!%p339_p2), %v2622_v6  ;;  %v2630_v17 = vld [vmem:[%s3359_s3 + $0x30] ss:$8 sps:$4 sm:$0xff] (!%p339_p2)   ;;  %v2631_v19 = vld [vmem:[%s3359_s3 + $0x44] ss:$8 sps:$4 sm:$0xff] (!%p339_p2)   ;;  %v2633_v21 = vld [vmem:[%s3359_s3 + $0x40] ss:$8 sps:$4 sm:$0xff] (!%p339_p2)  }
   0xa   : > { %v2634_v22 = vld [vmem:[%s3359_s3 + $0x54] ss:$8 sps:$4 sm:$0xff] (!%p339_p2)   ;;  %v2636_v24 = vld [vmem:[%s3359_s3 + $0x50] ss:$8 sps:$4 sm:$0xff] (!%p339_p2)   ;;  %v2637_v26 = vld [vmem:[%s3359_s3 + $0x64] ss:$8 sps:$4 sm:$0xff] (!%p339_p2)  }
   0xb   : > { %v2639_v28 = vld [vmem:[%s3359_s3 + $0x60] ss:$8 sps:$4 sm:$0xff] (!%p339_p2)   ;;  %v2640_v29 = vld [vmem:[%s3359_s3 + $0x74] ss:$8 sps:$4 sm:$0xff] (!%p339_p2)   ;;  %v2642_v31 = vld [vmem:[%s3359_s3 + $0x70] ss:$8 sps:$4 sm:$0xff] (!%p339_p2)  }
   0xc   : > { %1009 = vmatpush1.bf16.msra.mxu1 (!%p339_p2), %v2624_v8  ;;  %v2643_v32 = vld [vmem:[%s3359_s3 + $0x84] ss:$8 sps:$4 sm:$0xff] (!%p339_p2)   ;;  %v2645_v34 = vld [vmem:[%s3359_s3 + $0x80] ss:$8 sps:$4 sm:$0xff] (!%p339_p2)   ;;  %v2646_v35 = vld [vmem:[%s3359_s3 + $0x94] ss:$8 sps:$4 sm:$0xff] (!%p339_p2)  }
   0xd   : > { %s3369_s21 = smov (!%p379_p3, %s2244_s21), 63  ;;  %1010 = vmatprep.subr.bf16.mxu1 %v2625_v9  ;;  %v2648_v38 = vld [vmem:[%s3359_s3 + $0x90] ss:$8 sps:$4 sm:$0xff]   ;;  %v2649_v39 = vld [vmem:[%s3359_s3 + $0xa4] ss:$8 sps:$4 sm:$0xff]  }
   0xe   : > { %s2245_s28 = sshll.u32 %s3369_s21, 3  ;;  %v2651_v41 = vld [vmem:[%s3359_s3 + $0xa0] ss:$8 sps:$4 sm:$0xff]   ;;  %v2652_v42 = vld [vmem:[%s3359_s3 + $0xb4] ss:$8 sps:$4 sm:$0xff]  }
   0xf   : > { %s2800_s14 = scalar_lea.vmem %s3356_s0, %s2245_s28  ;;  %v2654_v45 = vld [vmem:[%s3359_s3 + $0xb0] ss:$8 sps:$4 sm:$0xff]   ;;  %v2655_v46 = vld [vmem:[%s3359_s3 + $0xc4] ss:$8 sps:$4 sm:$0xff]   ;;  %v2657_v48 = vld [vmem:[%s3359_s3 + $0xc0] ss:$8 sps:$4 sm:$0xff]   ;;  %s3287_s24 = scalar_lea.vmem %s3367_s11, %s2245_s28 }
  0x10   : > { %v391_v10 = vld [vmem:[%s2800_s14] sm:$0xff]  ;;  %v392_v11 = vld [vmem:[%s2800_s14 + $0x8] sm:$0xff]  ;;  %v393_v15 = vld [vmem:[%s2800_s14 + $0x10] sm:$0xff]  ;;  %1011 = vmatpush1.bf16.msra.mxu1 %v2627_v13 }
  0x11   : > { %v423_v12 = vpack.c.bf16 %v392_v11, %v391_v10  ;;  %v394_v16 = vld [vmem:[%s2800_s14 + $0x18] sm:$0xff]  ;;  %1012 = vmatprep.subr.bf16.mxu1 %v2628_v14  ;;  %v395_v20 = vld [vmem:[%s2800_s14 + $0x20] sm:$0xff]  ;;  %v396_v23 = vld [vmem:[%s2800_s14 + $0x28] sm:$0xff] }
  0x12   : > { %v424_v18 = vpack.c.bf16 %v394_v16, %v393_v15  ;;  %v425_v25 = vpack.c.bf16 %v396_v23, %v395_v20  ;;  %v397_v27 = vld [vmem:[%s2800_s14 + $0x30] sm:$0xff]  ;;  %v398_v30 = vld [vmem:[%s2800_s14 + $0x38] sm:$0xff]  ;;  %v399_v36 = vld [vmem:[%s2800_s14 + $0x40] sm:$0xff] }
  0x13   : > { %2251 = vmatmul.mubr.msk.bf16.vlgmr.msra.gmra.mrb[0].mxu0 %vm457_vm1, %v423_v12  ;;  %v426_v33 = vpack.c.bf16 %v398_v30, %v397_v27  ;;  %v400_v37 = vld [vmem:[%s2800_s14 + $0x48] sm:$0xff]  ;;  %v401_v43 = vld [vmem:[%s2800_s14 + $0x50] sm:$0xff]  ;;  %v402_v44 = vld [vmem:[%s2800_s14 + $0x58] sm:$0xff] }
  0x14   : > { %555 = vmatprep.mubr.bf16.mxu0 %v2707_v3  ;;  %1013 = vmatpush1.bf16.msra.mxu1 %v2630_v17  ;;  %v427_v40 = vpack.c.bf16 %v400_v37, %v399_v36  ;;  %v428_v47 = vpack.c.bf16 %v402_v44, %v401_v43  ;;  %v2658_v49 = vld [vmem:[%s3359_s3 + $0xd4] ss:$8 sps:$4 sm:$0xff]   ;;  %v403_v50 = vld [vmem:[%s2800_s14 + $0x60] sm:$0xff]  ;;  %v404_v51 = vld [vmem:[%s2800_s14 + $0x68] sm:$0xff] }
  0x15   : > { %1014 = vmatprep.subr.bf16.mxu1 %v2631_v19  ;;  %v429_v52 = vpack.c.bf16 %v404_v51, %v403_v50  ;;  %v405_v53 = vld [vmem:[%s2800_s14 + $0x70] sm:$0xff]  ;;  %v406_v54 = vld [vmem:[%s2800_s14 + $0x78] sm:$0xff]  ;;  %v407_v56 = vld [vmem:[%s2800_s14 + $0x80] sm:$0xff] }
  0x16   : > { %v430_v55 = vpack.c.bf16 %v406_v54, %v405_v53  ;;  %v408_v57 = vld [vmem:[%s2800_s14 + $0x88] sm:$0xff]  ;;  %v409_v59 = vld [vmem:[%s2800_s14 + $0x90] sm:$0xff]  ;;  %v410_v60 = vld [vmem:[%s2800_s14 + $0x98] sm:$0xff] }
  0x17   : > { %v431_v58 = vpack.c.bf16 %v408_v57, %v407_v56  ;;  %v432_v61 = vpack.c.bf16 %v410_v60, %v409_v59  ;;  %v411_v62 = vld [vmem:[%s2800_s14 + $0xa0] sm:$0xff]  ;;  %v412_v63 = vld [vmem:[%s2800_s14 + $0xa8] sm:$0xff]  ;;  %v413_v1 = vld [vmem:[%s2800_s14 + $0xb0] sm:$0xff] }
  0x18   : > { %1015 = vmatpush1.bf16.msra.mxu1 %v2633_v21  ;;  %v433_v0 = vpack.c.bf16 %v412_v63, %v411_v62  ;;  %v414_v2 = vld [vmem:[%s2800_s14 + $0xb8] sm:$0xff]  ;;  %v2661_v6 = vld [vmem:[%s3359_s3 + $0xe4] ss:$8 sps:$4 sm:$0xff]   ;;  %v2663_v7 = vld [vmem:[%s3359_s3 + $0xe0] ss:$8 sps:$4 sm:$0xff]  }
  0x19   : > { %1016 = vmatprep.subr.bf16.mxu1 %v2634_v22  ;;  %v2660_v4 = vld [vmem:[%s3359_s3 + $0xd0] ss:$8 sps:$4 sm:$0xff]   ;;  %v434_v5 = vpack.c.bf16 %v414_v2, %v413_v1  ;;  %v2664_v8 = vld [vmem:[%s3359_s3 + $0xf4] ss:$8 sps:$4 sm:$0xff]   ;;  %v415_v9 = vld [vmem:[%s2800_s14 + $0xc0] sm:$0xff] }
  0x1a   : > { %v416_v10 = vld [vmem:[%s2800_s14 + $0xc8] sm:$0xff]  ;;  %v2666_v11 = vld [vmem:[%s3359_s3 + $0xf0] ss:$8 sps:$4 sm:$0xff]   ;;  %v419_v16 = vld [vmem:[%s2800_s14 + $0xe0] sm:$0xff] }
  0x1b   : > { %2252 = vmatmul.mubr.msk.bf16.gmra.mrb[4].mxu0 %vm457_vm1, %v424_v18  ;;  %v435_v12 = vpack.c.bf16 %v416_v10, %v415_v9  ;;  %v417_v13 = vld [vmem:[%s2800_s14 + $0xd0] sm:$0xff]  ;;  %v418_v14 = vld [vmem:[%s2800_s14 + $0xd8] sm:$0xff]  ;;  %v420_v17 = vld [vmem:[%s2800_s14 + $0xe8] sm:$0xff] }
  0x1c   : > { %565 = vmatprep.mubr.bf16.mxu0 %v2707_v3  ;;  %1017 = vmatpush1.bf16.msra.mxu1 %v2636_v24  ;;  %v436_v15 = vpack.c.bf16 %v418_v14, %v417_v13  ;;  %v437_v18 = vpack.c.bf16 %v420_v17, %v419_v16  ;;  %v421_v19 = vld [vmem:[%s2800_s14 + $0xf0] sm:$0xff]  ;;  %v422_v20 = vld [vmem:[%s2800_s14 + $0xf8] sm:$0xff]  ;;  %v2667_v22 = vld [vmem:[%s3361_s5 + $0x40] sm:$0xff]   ;;  %v442_v24 = vlaneseq }
  0x1d   : > { %1018 = vmatprep.subr.bf16.mxu1 %v2637_v26  ;;  %v438_v21 = vpack.c.bf16 %v422_v20, %v421_v19  ;;  %v2668_v23 = vld [vmem:[%s3361_s5] sm:$0xff]   ;;  %2336 = vmatprep.subr.bf16.mxu0 %v2667_v22  ;;  %v2677_v59 = vld [vmem:[%s3361_s5 + $0x68] sm:$0xff]   ;;  %v2681_v14 = vld [vmem:[%s3361_s5 + $0x78] sm:$0xff]  }
  0x1e   : > { %2337 = vmatpush3.bf16.msra.mxu0 %v2668_v23  ;;  %v440_v26 = vld [vmem:[%s3358_s2] sm:$0x3]  ;;  %v2678_v1 = vld [vmem:[%s3361_s5 + $0x28] sm:$0xff]   ;;  %v2682_v20 = vld [vmem:[%s3361_s5 + $0x38] sm:$0xff]  }
  0x1f   : > { %v2676_v56 = vld [vmem:[%s3361_s5 + $0x20] sm:$0xff]  }
  0x20   : > { %1019 = vmatpush1.bf16.msra.mxu1 %v2639_v28  ;;  %v2669_v28 = vld [vmem:[%s3361_s5 + $0x48] sm:$0xff]  }
  0x21   : > { %1020 = vmatprep.subr.bf16.mxu1 %v2640_v29  ;;  %v2670_v29 = vld [vmem:[%s3361_s5 + $0x8] sm:$0xff]   ;;  %2338 = vmatprep.subr.bf16.mxu0 %v2669_v28 }
  0x22   : > { %2339 = vmatpush3.bf16.msra.mxu0 %v2670_v29 }
  0x23   : > { %2253 = vmatmul.mubr.msk.bf16.gmra.mrb[8].mxu0 %vm457_vm1, %v425_v25  ;;  %v2955_v25 = vshrl.u32 %v442_v24, 7 }
  0x24   : > { %575 = vmatprep.mubr.bf16.mxu0 %v2707_v3  ;;  %1021 = vmatpush1.bf16.msra.mxu1 %v2642_v31 }
  0x25   : > { %1022 = vmatprep.subr.bf16.mxu1 %v2643_v32  ;;  %v448_v27 = vsub.s32 1, %v2955_v25 }
  0x27   : > { %v2974_v31 = vrot.slane %v440_v26, %v448_v27 }
  0x28   : > { %1023 = vmatpush1.bf16.msra.mxu1 %v2645_v34 }
  0x29   : > { %1024 = vmatprep.subr.bf16.mxu1 %v2646_v35 }
  0x2b   : > { %2254 = vmatmul.mubr.msk.bf16.gmra.mrb[12].mxu0 %vm457_vm1, %v426_v33 }
  0x2c   : > { %585 = vmatprep.mubr.bf16.mxu0 %v2707_v3  ;;  %1025 = vmatpush1.bf16.msra.mxu1 %v2648_v38 }
  0x2d   : > { %1026 = vmatprep.subr.bf16.mxu1 %v2649_v39  ;;  %v2671_v39 = vld [vmem:[%s3361_s5 + $0x50] sm:$0xff]  }
  0x2e   : > { %2340 = vmatprep.subr.bf16.mxu0 %v2671_v39 }
  0x30   : > { %1027 = vmatpush1.bf16.msra.mxu1 %v2651_v41  ;;  %v2673_v41 = vld [vmem:[%s3361_s5 + $0x58] sm:$0xff]  }
  0x31   : > { %1028 = vmatprep.subr.bf16.mxu1 %v2652_v42 }
  0x33   : > { %2255 = vmatmul.mubr.msk.bf16.gmra.mrb[16].mxu0 %vm457_vm1, %v427_v40  ;;  %v2672_v40 = vld [vmem:[%s3361_s5 + $0x10] sm:$0xff]  }
  0x34   : > { %595 = vmatprep.mubr.bf16.mxu0 %v2707_v3  ;;  %1029 = vmatpush1.bf16.msra.mxu1 %v2654_v45 }
  0x35   : > { %1030 = vmatprep.subr.bf16.mxu1 %v2655_v46  ;;  %2341 = vmatpush3.bf16.msra.mxu0 %v2672_v40 }
  0x36   : > { %2342 = vmatprep.subr.bf16.mxu0 %v2673_v41 }
  0x38   : > { %1031 = vmatpush1.bf16.msra.mxu1 %v2657_v48 }
  0x39   : > { %1032 = vmatprep.subr.bf16.mxu1 %v2658_v49  ;;  %v2675_v49 = vld [vmem:[%s3361_s5 + $0x60] sm:$0xff]  }
  0x3b   : > { %2256 = vmatmul.mubr.msk.bf16.gmra.mrb[20].mxu0 %vm457_vm1, %v428_v47  ;;  %v2674_v47 = vld [vmem:[%s3361_s5 + $0x18] sm:$0xff]  }
  0x3c   : > { %605 = vmatprep.mubr.bf16.mxu0 %v2707_v3  ;;  %1033 = vmatpush1.bf16.msra.mxu1 %v2660_v4  ;;  %v2679_v4 = vld [vmem:[%s3361_s5 + $0x70] sm:$0xff]  }
  0x3d   : > { %1034 = vmatprep.subr.bf16.mxu1 %v2661_v6  ;;  %2343 = vmatpush3.bf16.msra.mxu0 %v2674_v47 }
  0x3e   : > { %2344 = vmatprep.subr.bf16.mxu0 %v2675_v49 }
  0x40   : > { %1035 = vmatpush1.bf16.msra.mxu1 %v2663_v7 }
  0x41   : > { %1036 = vmatprep.subr.bf16.mxu1 %v2664_v8  ;;  %2345 = vmatpush3.bf16.msra.mxu0 %v2676_v56 }
  0x42   : > { %2346 = vmatprep.subr.bf16.mxu0 %v2677_v59 }
  0x43   : > { %2257 = vmatmul.mubr.msk.bf16.gmra.mrb[24].mxu0 %vm457_vm1, %v429_v52 }
  0x44   : > { %615 = vmatprep.mubr.bf16.mxu0 %v2707_v3  ;;  %1037 = vmatpush1.bf16.msra.mxu1 %v2666_v11  ;;  %v2680_v11 = vld [vmem:[%s3361_s5 + $0x30] sm:$0xff]  }
  0x45   : > { %2347 = vmatpush3.bf16.msra.mxu0 %v2678_v1 }
  0x46   : > { %2348 = vmatprep.subr.bf16.mxu0 %v2679_v4 }
  0x49   : > { %2349 = vmatpush3.bf16.msra.mxu0 %v2680_v11 }
  0x4a   : > { %2350 = vmatprep.subr.bf16.mxu0 %v2681_v14 }
  0x4b   : > { %2258 = vmatmul.mubr.msk.bf16.gmra.mrb[28].mxu0 %vm457_vm1, %v430_v55 }
  0x4c   : > { %625 = vmatprep.mubr.bf16.mxu0 %v2707_v3 }
  0x4d   : > { %2351 = vmatpush3.bf16.msra.mxu0 %v2682_v20 }
  0x53   : > { %2259 = vmatmul.mubr.msk.bf16.gmra.mrb[32].mxu0 %vm457_vm1, %v431_v58 }
  0x54   : > { %635 = vmatprep.mubr.bf16.mxu0 %v2707_v3 }
  0x5b   : > { %2260 = vmatmul.mubr.msk.bf16.gmra.mrb[36].mxu0 %vm457_vm1, %v432_v61 }
  0x5c   : > { %645 = vmatprep.mubr.bf16.mxu0 %v2707_v3 }
  0x63   : > { %2261 = vmatmul.mubr.msk.bf16.gmra.mrb[40].mxu0 %vm457_vm1, %v433_v0 }
  0x64   : > { %655 = vmatprep.mubr.bf16.mxu0 %v2707_v3 }
  0x6b   : > { %2262 = vmatmul.mubr.msk.bf16.gmra.mrb[44].mxu0 %vm457_vm1, %v434_v5 }
  0x6c   : > { %665 = vmatprep.mubr.bf16.mxu0 %v2707_v3 }
  0x73   : > { %2263 = vmatmul.mubr.msk.bf16.gmra.mrb[48].mxu0 %vm457_vm1, %v435_v12 }
  0x74   : > { %675 = vmatprep.mubr.bf16.mxu0 %v2707_v3 }
  0x7b   : > { %2264 = vmatmul.mubr.msk.bf16.gmra.mrb[52].mxu0 %vm457_vm1, %v436_v15 }
  0x7c   : > { %685 = vmatprep.mubr.bf16.mxu0 %v2707_v3 }
  0x83   : > { %2265 = vmatmul.mubr.msk.bf16.gmra.mrb[56].mxu0 %vm457_vm1, %v437_v18 }
  0x84   : > { %695 = vmatprep.mubr.bf16.mxu0 %v2707_v3  ;;  %v444_v3 = vsub.s32 0, %v2955_v25 }
  0x86   : > { %v2970_v30 = vrot.slane %v440_v26, %v444_v3 }
  0x8b   : > { %2266 = vmatmul.mubr.msk.bf16.gmra.mrb[60].mxu0 %vm457_vm1, %v438_v21 }
  0xe6   : > { %v547_v32 = vpop.f32.mrb[0].mxu0 }
  0xe7   : > { %v548_v33 = vadd.f32 %v547_v32, %v2970_v30  ;;  %v549_v34 = vpop.f32.mrb[1].mxu0 }
  0xe8   : > { %v550_v35 = vadd.f32 %v549_v34, %v2974_v31  ;;  %v551_v36 = vpop.f32.mrb[2].mxu0 }
  0xe9   : > { %v552_v37 = vadd.f32 %v551_v36, %v2970_v30  ;;  %v553_v38 = vpop.f32.mrb[3].mxu0  ;;  %v706_v43 = vmax.f32 %v548_v33, 0.0 }
  0xea   : > { %v554_v42 = vadd.f32 %v553_v38, %v2974_v31  ;;  %v707_v45 = vmax.f32 %v550_v35, 0.0 }
  0xeb   : > { %v708_v44 = vmax.f32 %v552_v37, 0.0 }
  0xec   : > { %v709_v46 = vmax.f32 %v554_v42, 0.0 }
  0xed   : > { %v770_v48 = vpack.c.bf16 %v708_v44, %v706_v43 }
  0xee   : > { %v557_v50 = vpop.f32.mrb[4].mxu0  ;;  %v771_v51 = vpack.c.bf16 %v709_v46, %v707_v45 }
  0xef   : > { %v558_v52 = vadd.f32 %v557_v50, %v2970_v30  ;;  %v559_v53 = vpop.f32.mrb[5].mxu0 }
  0xf0   : > { %v560_v54 = vadd.f32 %v559_v53, %v2974_v31  ;;  %v561_v55 = vpop.f32.mrb[6].mxu0  ;;  %1038 = vmatprep.mubr.bf16.mxu1 %v771_v51 }
  0xf1   : > { %v562_v57 = vadd.f32 %v561_v55, %v2970_v30  ;;  %v563_v58 = vpop.f32.mrb[7].mxu0  ;;  %1039 = vmatmul.mubr.bf16.vlgmr.msra.gmra.mrb[0].mxu1 %v770_v48  ;;  %v710_v61 = vmax.f32 %v558_v52, 0.0 }
  0xf2   : > { %v564_v60 = vadd.f32 %v563_v58, %v2974_v31  ;;  %v711_v63 = vmax.f32 %v560_v54, 0.0 }
  0xf3   : > { %v712_v62 = vmax.f32 %v562_v57, 0.0 }
  0xf4   : > { %v713_v0 = vmax.f32 %v564_v60, 0.0 }
  0xf5   : > { %v772_v2 = vpack.c.bf16 %v712_v62, %v710_v61 }
  0xf6   : > { %v773_v5 = vpack.c.bf16 %v713_v0, %v711_v63  ;;  %v567_v6 = vpop.f32.mrb[8].mxu0 }
  0xf7   : > { %v568_v7 = vadd.f32 %v567_v6, %v2970_v30  ;;  %v569_v8 = vpop.f32.mrb[9].mxu0 }
  0xf8   : > { %v570_v9 = vadd.f32 %v569_v8, %v2974_v31  ;;  %v571_v10 = vpop.f32.mrb[10].mxu0  ;;  %1048 = vmatprep.mubr.bf16.mxu1 %v773_v5 }
  0xf9   : > { %v572_v12 = vadd.f32 %v571_v10, %v2970_v30  ;;  %v573_v13 = vpop.f32.mrb[11].mxu0  ;;  %1049 = vmatmul.mubr.bf16.gmra.mrb[4].mxu1 %v772_v2  ;;  %v714_v16 = vmax.f32 %v568_v7, 0.0 }
  0xfa   : > { %v574_v15 = vadd.f32 %v573_v13, %v2974_v31  ;;  %v715_v18 = vmax.f32 %v570_v9, 0.0 }
  0xfb   : > { %v716_v17 = vmax.f32 %v572_v12, 0.0 }
  0xfc   : > { %v717_v19 = vmax.f32 %v574_v15, 0.0 }
  0xfd   : > { %v774_v21 = vpack.c.bf16 %v716_v17, %v714_v16 }
  0xfe   : > { %v775_v22 = vpack.c.bf16 %v717_v19, %v715_v18  ;;  %v577_v23 = vpop.f32.mrb[12].mxu0 }
  0xff   : > { %v578_v24 = vadd.f32 %v577_v23, %v2970_v30  ;;  %v579_v26 = vpop.f32.mrb[13].mxu0 }
 0x100   : > { %v580_v28 = vadd.f32 %v579_v26, %v2974_v31  ;;  %v581_v29 = vpop.f32.mrb[14].mxu0  ;;  %1058 = vmatprep.mubr.bf16.mxu1 %v775_v22 }
 0x101   : > { %v582_v32 = vadd.f32 %v581_v29, %v2970_v30  ;;  %v583_v33 = vpop.f32.mrb[15].mxu0  ;;  %1059 = vmatmul.mubr.bf16.gmra.mrb[8].mxu1 %v774_v21  ;;  %v718_v35 = vmax.f32 %v578_v24, 0.0 }
 0x102   : > { %v584_v34 = vadd.f32 %v583_v33, %v2974_v31  ;;  %v719_v37 = vmax.f32 %v580_v28, 0.0 }
 0x103   : > { %v720_v36 = vmax.f32 %v582_v32, 0.0 }
 0x104   : > { %v721_v38 = vmax.f32 %v584_v34, 0.0 }
 0x105   : > { %v776_v39 = vpack.c.bf16 %v720_v36, %v718_v35 }
 0x106   : > { %v777_v40 = vpack.c.bf16 %v721_v38, %v719_v37  ;;  %v587_v41 = vpop.f32.mrb[16].mxu0 }
 0x107   : > { %v588_v42 = vadd.f32 %v587_v41, %v2970_v30  ;;  %v589_v43 = vpop.f32.mrb[17].mxu0 }
 0x108   : > { %v590_v44 = vadd.f32 %v589_v43, %v2974_v31  ;;  %v591_v45 = vpop.f32.mrb[18].mxu0  ;;  %1068 = vmatprep.mubr.bf16.mxu1 %v777_v40 }
 0x109   : > { %v592_v46 = vadd.f32 %v591_v45, %v2970_v30  ;;  %v593_v47 = vpop.f32.mrb[19].mxu0  ;;  %1069 = vmatmul.mubr.bf16.gmra.mrb[12].mxu1 %v776_v39  ;;  %v722_v49 = vmax.f32 %v588_v42, 0.0 }
 0x10a   : > { %v594_v48 = vadd.f32 %v593_v47, %v2974_v31  ;;  %v723_v51 = vmax.f32 %v590_v44, 0.0 }
 0x10b   : > { %v724_v50 = vmax.f32 %v592_v46, 0.0 }
 0x10c   : > { %v725_v52 = vmax.f32 %v594_v48, 0.0 }
 0x10d   : > { %v778_v53 = vpack.c.bf16 %v724_v50, %v722_v49 }
 0x10e   : > { %v779_v54 = vpack.c.bf16 %v725_v52, %v723_v51  ;;  %v597_v55 = vpop.f32.mrb[20].mxu0 }
 0x10f   : > { %v598_v56 = vadd.f32 %v597_v55, %v2970_v30  ;;  %v599_v57 = vpop.f32.mrb[21].mxu0 }
 0x110   : > { %v600_v58 = vadd.f32 %v599_v57, %v2974_v31  ;;  %v601_v59 = vpop.f32.mrb[22].mxu0  ;;  %1078 = vmatprep.mubr.bf16.mxu1 %v779_v54 }
 0x111   : > { %v602_v60 = vadd.f32 %v601_v59, %v2970_v30  ;;  %v603_v61 = vpop.f32.mrb[23].mxu0  ;;  %1079 = vmatmul.mubr.bf16.gmra.mrb[16].mxu1 %v778_v53  ;;  %v726_v63 = vmax.f32 %v598_v56, 0.0 }
 0x112   : > { %v604_v62 = vadd.f32 %v603_v61, %v2974_v31  ;;  %v727_v1 = vmax.f32 %v600_v58, 0.0 }
 0x113   : > { %v728_v0 = vmax.f32 %v602_v60, 0.0 }
 0x114   : > { %v729_v2 = vmax.f32 %v604_v62, 0.0 }
 0x115   : > { %v780_v4 = vpack.c.bf16 %v728_v0, %v726_v63 }
 0x116   : > { %v781_v5 = vpack.c.bf16 %v729_v2, %v727_v1  ;;  %v607_v6 = vpop.f32.mrb[24].mxu0 }
 0x117   : > { %v608_v7 = vadd.f32 %v607_v6, %v2970_v30  ;;  %v609_v8 = vpop.f32.mrb[25].mxu0 }
 0x118   : > { %v610_v9 = vadd.f32 %v609_v8, %v2974_v31  ;;  %v611_v10 = vpop.f32.mrb[26].mxu0  ;;  %1088 = vmatprep.mubr.bf16.mxu1 %v781_v5 }
 0x119   : > { %v612_v11 = vadd.f32 %v611_v10, %v2970_v30  ;;  %v613_v12 = vpop.f32.mrb[27].mxu0  ;;  %1089 = vmatmul.mubr.bf16.gmra.mrb[20].mxu1 %v780_v4  ;;  %v730_v14 = vmax.f32 %v608_v7, 0.0 }
 0x11a   : > { %v614_v13 = vadd.f32 %v613_v12, %v2974_v31  ;;  %v731_v16 = vmax.f32 %v610_v9, 0.0 }
 0x11b   : > { %v732_v15 = vmax.f32 %v612_v11, 0.0 }
 0x11c   : > { %v733_v17 = vmax.f32 %v614_v13, 0.0 }
 0x11d   : > { %v782_v18 = vpack.c.bf16 %v732_v15, %v730_v14 }
 0x11e   : > { %v783_v19 = vpack.c.bf16 %v733_v17, %v731_v16  ;;  %v617_v20 = vpop.f32.mrb[28].mxu0 }
 0x11f   : > { %v618_v21 = vadd.f32 %v617_v20, %v2970_v30  ;;  %v619_v22 = vpop.f32.mrb[29].mxu0 }
 0x120   : > { %v620_v23 = vadd.f32 %v619_v22, %v2974_v31  ;;  %v621_v24 = vpop.f32.mrb[30].mxu0  ;;  %1098 = vmatprep.mubr.bf16.mxu1 %v783_v19 }
 0x121   : > { %v622_v26 = vadd.f32 %v621_v24, %v2970_v30  ;;  %v623_v28 = vpop.f32.mrb[31].mxu0  ;;  %1099 = vmatmul.mubr.bf16.gmra.mrb[24].mxu1 %v782_v18  ;;  %v734_v32 = vmax.f32 %v618_v21, 0.0 }
 0x122   : > { %v624_v29 = vadd.f32 %v623_v28, %v2974_v31  ;;  %v735_v34 = vmax.f32 %v620_v23, 0.0 }
 0x123   : > { %v736_v33 = vmax.f32 %v622_v26, 0.0 }
 0x124   : > { %v737_v35 = vmax.f32 %v624_v29, 0.0 }
 0x125   : > { %v784_v36 = vpack.c.bf16 %v736_v33, %v734_v32 }
 0x126   : > { %v785_v37 = vpack.c.bf16 %v737_v35, %v735_v34  ;;  %v627_v38 = vpop.f32.mrb[32].mxu0 }
 0x127   : > { %v628_v39 = vadd.f32 %v627_v38, %v2970_v30  ;;  %v629_v40 = vpop.f32.mrb[33].mxu0 }
 0x128   : > { %v630_v41 = vadd.f32 %v629_v40, %v2974_v31  ;;  %v631_v42 = vpop.f32.mrb[34].mxu0  ;;  %1108 = vmatprep.mubr.bf16.mxu1 %v785_v37 }
 0x129   : > { %v632_v43 = vadd.f32 %v631_v42, %v2970_v30  ;;  %v633_v44 = vpop.f32.mrb[35].mxu0  ;;  %1109 = vmatmul.mubr.bf16.gmra.mrb[28].mxu1 %v784_v36  ;;  %v738_v46 = vmax.f32 %v628_v39, 0.0 }
 0x12a   : > { %v634_v45 = vadd.f32 %v633_v44, %v2974_v31  ;;  %v739_v48 = vmax.f32 %v630_v41, 0.0 }
 0x12b   : > { %v740_v47 = vmax.f32 %v632_v43, 0.0 }
 0x12c   : > { %v741_v49 = vmax.f32 %v634_v45, 0.0 }
 0x12d   : > { %v786_v50 = vpack.c.bf16 %v740_v47, %v738_v46 }
 0x12e   : > { %v787_v51 = vpack.c.bf16 %v741_v49, %v739_v48  ;;  %v637_v52 = vpop.f32.mrb[36].mxu0 }
 0x12f   : > { %v638_v53 = vadd.f32 %v637_v52, %v2970_v30  ;;  %v639_v54 = vpop.f32.mrb[37].mxu0 }
 0x130   : > { %v640_v55 = vadd.f32 %v639_v54, %v2974_v31  ;;  %v641_v56 = vpop.f32.mrb[38].mxu0  ;;  %1118 = vmatprep.mubr.bf16.mxu1 %v787_v51 }
 0x131   : > { %v642_v57 = vadd.f32 %v641_v56, %v2970_v30  ;;  %v643_v58 = vpop.f32.mrb[39].mxu0  ;;  %1119 = vmatmul.mubr.bf16.gmra.mrb[32].mxu1 %v786_v50  ;;  %v742_v60 = vmax.f32 %v638_v53, 0.0 }
 0x132   : > { %v644_v59 = vadd.f32 %v643_v58, %v2974_v31  ;;  %v743_v62 = vmax.f32 %v640_v55, 0.0 }
 0x133   : > { %v744_v61 = vmax.f32 %v642_v57, 0.0 }
 0x134   : > { %v745_v63 = vmax.f32 %v644_v59, 0.0 }
 0x135   : > { %v788_v0 = vpack.c.bf16 %v744_v61, %v742_v60 }
 0x136   : > { %v789_v1 = vpack.c.bf16 %v745_v63, %v743_v62  ;;  %v647_v2 = vpop.f32.mrb[40].mxu0 }
 0x137   : > { %v648_v4 = vadd.f32 %v647_v2, %v2970_v30  ;;  %v649_v5 = vpop.f32.mrb[41].mxu0 }
 0x138   : > { %v650_v6 = vadd.f32 %v649_v5, %v2974_v31  ;;  %v651_v7 = vpop.f32.mrb[42].mxu0  ;;  %1128 = vmatprep.mubr.bf16.mxu1 %v789_v1 }
 0x139   : > { %v652_v8 = vadd.f32 %v651_v7, %v2970_v30  ;;  %v653_v9 = vpop.f32.mrb[43].mxu0  ;;  %1129 = vmatmul.mubr.bf16.gmra.mrb[36].mxu1 %v788_v0  ;;  %v746_v11 = vmax.f32 %v648_v4, 0.0 }
 0x13a   : > { %v654_v10 = vadd.f32 %v653_v9, %v2974_v31  ;;  %v747_v13 = vmax.f32 %v650_v6, 0.0 }
 0x13b   : > { %v748_v12 = vmax.f32 %v652_v8, 0.0 }
 0x13c   : > { %v749_v14 = vmax.f32 %v654_v10, 0.0 }
 0x13d   : > { %v790_v15 = vpack.c.bf16 %v748_v12, %v746_v11 }
 0x13e   : > { %v791_v16 = vpack.c.bf16 %v749_v14, %v747_v13  ;;  %v657_v17 = vpop.f32.mrb[44].mxu0 }
 0x13f   : > { %v658_v18 = vadd.f32 %v657_v17, %v2970_v30  ;;  %v659_v19 = vpop.f32.mrb[45].mxu0 }
 0x140   : > { %v660_v20 = vadd.f32 %v659_v19, %v2974_v31  ;;  %v661_v21 = vpop.f32.mrb[46].mxu0  ;;  %1138 = vmatprep.mubr.bf16.mxu1 %v791_v16 }
 0x141   : > { %v662_v22 = vadd.f32 %v661_v21, %v2970_v30  ;;  %v663_v23 = vpop.f32.mrb[47].mxu0  ;;  %1139 = vmatmul.mubr.bf16.gmra.mrb[40].mxu1 %v790_v15  ;;  %v750_v26 = vmax.f32 %v658_v18, 0.0 }
 0x142   : > { %v664_v24 = vadd.f32 %v663_v23, %v2974_v31  ;;  %v751_v29 = vmax.f32 %v660_v20, 0.0 }
 0x143   : > { %v752_v28 = vmax.f32 %v662_v22, 0.0 }
 0x144   : > { %v753_v32 = vmax.f32 %v664_v24, 0.0 }
 0x145   : > { %v792_v33 = vpack.c.bf16 %v752_v28, %v750_v26 }
 0x146   : > { %v793_v34 = vpack.c.bf16 %v753_v32, %v751_v29  ;;  %v667_v35 = vpop.f32.mrb[48].mxu0  ;;  %v834_v32 = vld [vmem:[%s3360_s4] sm:$0x3] }
 0x147   : > { %v668_v36 = vadd.f32 %v667_v35, %v2970_v30  ;;  %v669_v37 = vpop.f32.mrb[49].mxu0 }
 0x148   : > { %v670_v38 = vadd.f32 %v669_v37, %v2974_v31  ;;  %v671_v39 = vpop.f32.mrb[50].mxu0  ;;  %1148 = vmatprep.mubr.bf16.mxu1 %v793_v34 }
 0x149   : > { %v672_v40 = vadd.f32 %v671_v39, %v2970_v30  ;;  %v673_v41 = vpop.f32.mrb[51].mxu0  ;;  %1149 = vmatmul.mubr.bf16.gmra.mrb[44].mxu1 %v792_v33  ;;  %v754_v43 = vmax.f32 %v668_v36, 0.0  ;;  %v3081_v33 = vrot.slane %v834_v32, %v444_v3 }
 0x14a   : > { %v674_v42 = vadd.f32 %v673_v41, %v2974_v31  ;;  %v755_v45 = vmax.f32 %v670_v38, 0.0 }
 0x14b   : > { %v756_v44 = vmax.f32 %v672_v40, 0.0  ;;  %v2683_v40 = vld [vmem:[%s3363_s7] sm:$0xff]  }
 0x14c   : > { %v757_v46 = vmax.f32 %v674_v42, 0.0  ;;  %2496 = vmatprep.subr.bf16.mxu0 %v2683_v40  ;;  %2592 = vmatprep.subr.bf16.mxu1 %v2683_v40 }
 0x14d   : > { %v794_v47 = vpack.c.bf16 %v756_v44, %v754_v43  ;;  %2600 = vmatpush3.bf16.msra.mxu1 %v2683_v40 }
 0x14e   : > { %v795_v48 = vpack.c.bf16 %v757_v46, %v755_v45  ;;  %v677_v49 = vpop.f32.mrb[52].mxu0 }
 0x14f   : > { %v678_v50 = vadd.f32 %v677_v49, %v2970_v30  ;;  %v679_v51 = vpop.f32.mrb[53].mxu0  ;;  %v2685_v49 = vld [vmem:[%s3363_s7 + $0x10] sm:$0xff]  }
 0x150   : > { %v680_v52 = vadd.f32 %v679_v51, %v2974_v31  ;;  %v681_v53 = vpop.f32.mrb[54].mxu0  ;;  %1158 = vmatprep.mubr.bf16.mxu1 %v795_v48 }
 0x151   : > { %v682_v54 = vadd.f32 %v681_v53, %v2970_v30  ;;  %v683_v55 = vpop.f32.mrb[55].mxu0  ;;  %1159 = vmatmul.mubr.bf16.gmra.mrb[48].mxu1 %v794_v47  ;;  %v758_v57 = vmax.f32 %v678_v50, 0.0 }
 0x152   : > { %v684_v56 = vadd.f32 %v683_v55, %v2974_v31  ;;  %v759_v59 = vmax.f32 %v680_v52, 0.0 }
 0x153   : > { %v760_v58 = vmax.f32 %v682_v54, 0.0 }
 0x154   : > { %v761_v60 = vmax.f32 %v684_v56, 0.0 }
 0x155   : > { %v796_v61 = vpack.c.bf16 %v760_v58, %v758_v57  ;;  %v2686_v57 = vld [vmem:[%s3363_s7 + $0x18] sm:$0xff]  }
 0x156   : > { %v797_v62 = vpack.c.bf16 %v761_v60, %v759_v59  ;;  %v687_v63 = vpop.f32.mrb[56].mxu0 }
 0x157   : > { %v688_v0 = vadd.f32 %v687_v63, %v2970_v30  ;;  %v689_v1 = vpop.f32.mrb[57].mxu0 }
 0x158   : > { %v690_v2 = vadd.f32 %v689_v1, %v2974_v31  ;;  %v691_v4 = vpop.f32.mrb[58].mxu0  ;;  %1168 = vmatprep.mubr.bf16.mxu1 %v797_v62 }
 0x159   : > { %v692_v5 = vadd.f32 %v691_v4, %v2970_v30  ;;  %v693_v6 = vpop.f32.mrb[59].mxu0  ;;  %1169 = vmatmul.mubr.bf16.gmra.mrb[52].mxu1 %v796_v61  ;;  %v762_v8 = vmax.f32 %v688_v0, 0.0 }
 0x15a   : > { %v694_v7 = vadd.f32 %v693_v6, %v2974_v31  ;;  %v763_v10 = vmax.f32 %v690_v2, 0.0 }
 0x15b   : > { %v764_v9 = vmax.f32 %v692_v5, 0.0 }
 0x15c   : > { %v765_v11 = vmax.f32 %v694_v7, 0.0 }
 0x15d   : > { %v798_v12 = vpack.c.bf16 %v764_v9, %v762_v8 }
 0x15e   : > { %v799_v13 = vpack.c.bf16 %v765_v11, %v763_v10  ;;  %v697_v14 = vpop.f32.mrb[60].mxu0 }
 0x15f   : > { %v698_v15 = vadd.f32 %v697_v14, %v2970_v30  ;;  %v699_v16 = vpop.f32.mrb[61].mxu0 }
 0x160   : > { %v700_v17 = vadd.f32 %v699_v16, %v2974_v31  ;;  %v701_v18 = vpop.f32.mrb[62].mxu0  ;;  %1178 = vmatprep.mubr.bf16.mxu1 %v799_v13 }
 0x161   : > { %v702_v19 = vadd.f32 %v701_v18, %v2970_v30  ;;  %v703_v20 = vpop.f32.mrb[63].mxu0  ;;  %1179 = vmatmul.mubr.bf16.gmra.mrb[56].mxu1 %v798_v12  ;;  %v766_v22 = vmax.f32 %v698_v15, 0.0  ;;  %v3085_v30 = vrot.slane %v834_v32, %v448_v27  ;;  %v2684_v27 = vld [vmem:[%s3363_s7 + $0x8] sm:$0xff]  }
 0x162   : > { %v704_v21 = vadd.f32 %v703_v20, %v2974_v31  ;;  %v767_v24 = vmax.f32 %v700_v17, 0.0  ;;  %2593 = vmatprep.subr.bf16.mxu1 %v2684_v27 }
 0x163   : > { %v768_v23 = vmax.f32 %v702_v19, 0.0  ;;  %2601 = vmatpush3.bf16.msra.mxu1 %v2684_v27 }
 0x164   : > { %v769_v26 = vmax.f32 %v704_v21, 0.0  ;;  %2594 = vmatprep.subr.bf16.mxu1 %v2685_v49 }
 0x165   : > { %v800_v28 = vpack.c.bf16 %v768_v23, %v766_v22 }
 0x166   : > { %v801_v29 = vpack.c.bf16 %v769_v26, %v767_v24 }
 0x167   : > { %2602 = vmatpush3.bf16.msra.mxu1 %v2685_v49 }
 0x168   : > { %1188 = vmatprep.mubr.bf16.mxu1 %v801_v29  ;;  %2595 = vmatprep.subr.bf16.mxu1 %v2686_v57 }
 0x169   : > { %1189 = vmatmul.mubr.bf16.gmra.mrb[60].mxu1 %v800_v28 }
 0x16b   : > { %2603 = vmatpush3.bf16.msra.mxu1 %v2686_v57 }
 0x1c4   : > { %v1040_v31 = vpop.f32.mrb[0].mxu1 }
 0x1c5   : > { %v1041_v34 = vadd.f32 %v1040_v31, %v3081_v33  ;;  %v1042_v35 = vpop.f32.mrb[1].mxu1 }
 0x1c6   : > { %v1043_v36 = vadd.f32 %v1042_v35, %v3085_v30  ;;  %v1044_v37 = vpop.f32.mrb[2].mxu1 }
 0x1c7   : > { %v1045_v38 = vadd.f32 %v1044_v37, %v3081_v33  ;;  %v1046_v39 = vpop.f32.mrb[3].mxu1  ;;  %v1199_v41 = vmax.f32 %v1041_v34, 0.0 }
 0x1c8   : > { %v1047_v3 = vadd.f32 %v1046_v39, %v3085_v30  ;;  %v1200_v42 = vmax.f32 %v1043_v36, 0.0 }
 0x1c9   : > { %v1201_v25 = vmax.f32 %v1045_v38, 0.0 }
 0x1ca   : > { %v1202_v43 = vmax.f32 %v1047_v3, 0.0 }
 0x1cb   : > { %v1263_v44 = vpack.c.bf16 %v1201_v25, %v1199_v41 }
 0x1cc   : > { %v1264_v45 = vpack.c.bf16 %v1202_v43, %v1200_v42  ;;  %v1050_v46 = vpop.f32.mrb[4].mxu1 }
 0x1cd   : > { %v1051_v47 = vadd.f32 %v1050_v46, %v3081_v33  ;;  %v1052_v48 = vpop.f32.mrb[5].mxu1 }
 0x1ce   : > { %v1053_v50 = vadd.f32 %v1052_v48, %v3085_v30  ;;  %v1054_v51 = vpop.f32.mrb[6].mxu1  ;;  %1462 = vmatprep.mubr.bf16.mxu0 %v1264_v45 }
 0x1cf   : > { %v1055_v52 = vadd.f32 %v1054_v51, %v3081_v33  ;;  %v1056_v53 = vpop.f32.mrb[7].mxu1  ;;  %1463 = vmatmul.mubr.bf16.vlgmr.msra.gmra.mrb[64].mxu0 %v1263_v44  ;;  %v1203_v55 = vmax.f32 %v1051_v47, 0.0 }
 0x1d0   : > { %v1057_v54 = vadd.f32 %v1056_v53, %v3085_v30  ;;  %2497 = vmatpush3.bf16.msra.mxu0 %v2683_v40  ;;  %v1204_v58 = vmax.f32 %v1053_v50, 0.0 }
 0x1d1   : > { %v1205_v56 = vmax.f32 %v1055_v52, 0.0  ;;  %2498 = vmatprep.subr.bf16.mxu0 %v2684_v27 }
 0x1d2   : > { %v1206_v59 = vmax.f32 %v1057_v54, 0.0 }
 0x1d3   : > { %v1265_v60 = vpack.c.bf16 %v1205_v56, %v1203_v55 }
 0x1d4   : > { %v1266_v61 = vpack.c.bf16 %v1206_v59, %v1204_v58  ;;  %v1060_v62 = vpop.f32.mrb[8].mxu1  ;;  %2499 = vmatpush3.bf16.msra.mxu0 %v2684_v27 }
 0x1d5   : > { %v1061_v63 = vadd.f32 %v1060_v62, %v3081_v33  ;;  %v1062_v0 = vpop.f32.mrb[9].mxu1  ;;  %2500 = vmatprep.subr.bf16.mxu0 %v2685_v49 }
 0x1d6   : > { %v1063_v1 = vadd.f32 %v1062_v0, %v3085_v30  ;;  %v1064_v2 = vpop.f32.mrb[10].mxu1  ;;  %1470 = vmatprep.mubr.bf16.mxu0 %v1266_v61 }
 0x1d7   : > { %v1065_v4 = vadd.f32 %v1064_v2, %v3081_v33  ;;  %v1066_v5 = vpop.f32.mrb[11].mxu1  ;;  %1471 = vmatmul.mubr.bf16.gmra.mrb[68].mxu0 %v1265_v60  ;;  %v1207_v7 = vmax.f32 %v1061_v63, 0.0 }
 0x1d8   : > { %v1067_v6 = vadd.f32 %v1066_v5, %v3085_v30  ;;  %2501 = vmatpush3.bf16.msra.mxu0 %v2685_v49  ;;  %v1208_v9 = vmax.f32 %v1063_v1, 0.0 }
 0x1d9   : > { %v1209_v8 = vmax.f32 %v1065_v4, 0.0  ;;  %2502 = vmatprep.subr.bf16.mxu0 %v2686_v57 }
 0x1da   : > { %v1210_v10 = vmax.f32 %v1067_v6, 0.0 }
 0x1db   : > { %v1267_v11 = vpack.c.bf16 %v1209_v8, %v1207_v7 }
 0x1dc   : > { %v1268_v12 = vpack.c.bf16 %v1210_v10, %v1208_v9  ;;  %v1070_v13 = vpop.f32.mrb[12].mxu1  ;;  %2503 = vmatpush3.bf16.msra.mxu0 %v2686_v57 }
 0x1dd   : > { %v1071_v14 = vadd.f32 %v1070_v13, %v3081_v33  ;;  %v1072_v15 = vpop.f32.mrb[13].mxu1 }
 0x1de   : > { %v1073_v16 = vadd.f32 %v1072_v15, %v3085_v30  ;;  %v1074_v17 = vpop.f32.mrb[14].mxu1  ;;  %1478 = vmatprep.mubr.bf16.mxu0 %v1268_v12 }
 0x1df   : > { %v1075_v18 = vadd.f32 %v1074_v17, %v3081_v33  ;;  %v1076_v19 = vpop.f32.mrb[15].mxu1  ;;  %1479 = vmatmul.mubr.bf16.gmra.mrb[72].mxu0 %v1267_v11  ;;  %v1211_v21 = vmax.f32 %v1071_v14, 0.0 }
 0x1e0   : > { %v1077_v20 = vadd.f32 %v1076_v19, %v3085_v30  ;;  %v1212_v23 = vmax.f32 %v1073_v16, 0.0 }
 0x1e1   : > { %v1213_v22 = vmax.f32 %v1075_v18, 0.0 }
 0x1e2   : > { %v1214_v24 = vmax.f32 %v1077_v20, 0.0 }
 0x1e3   : > { %v1269_v26 = vpack.c.bf16 %v1213_v22, %v1211_v21 }
 0x1e4   : > { %v1270_v28 = vpack.c.bf16 %v1214_v24, %v1212_v23  ;;  %v1080_v29 = vpop.f32.mrb[16].mxu1 }
 0x1e5   : > { %v1081_v32 = vadd.f32 %v1080_v29, %v3081_v33  ;;  %v1082_v31 = vpop.f32.mrb[17].mxu1 }
 0x1e6   : > { %v1083_v34 = vadd.f32 %v1082_v31, %v3085_v30  ;;  %v1084_v35 = vpop.f32.mrb[18].mxu1  ;;  %1486 = vmatprep.mubr.bf16.mxu0 %v1270_v28 }
 0x1e7   : > { %v1085_v36 = vadd.f32 %v1084_v35, %v3081_v33  ;;  %v1086_v37 = vpop.f32.mrb[19].mxu1  ;;  %1487 = vmatmul.mubr.bf16.gmra.mrb[76].mxu0 %v1269_v26  ;;  %v1215_v39 = vmax.f32 %v1081_v32, 0.0 }
 0x1e8   : > { %v1087_v38 = vadd.f32 %v1086_v37, %v3085_v30  ;;  %v1216_v3 = vmax.f32 %v1083_v34, 0.0 }
 0x1e9   : > { %v1217_v40 = vmax.f32 %v1085_v36, 0.0 }
 0x1ea   : > { %v1218_v41 = vmax.f32 %v1087_v38, 0.0 }
 0x1eb   : > { %v1271_v25 = vpack.c.bf16 %v1217_v40, %v1215_v39 }
 0x1ec   : > { %v1272_v27 = vpack.c.bf16 %v1218_v41, %v1216_v3  ;;  %v1090_v42 = vpop.f32.mrb[20].mxu1 }
 0x1ed   : > { %v1091_v43 = vadd.f32 %v1090_v42, %v3081_v33  ;;  %v1092_v44 = vpop.f32.mrb[21].mxu1 }
 0x1ee   : > { %v1093_v45 = vadd.f32 %v1092_v44, %v3085_v30  ;;  %v1094_v46 = vpop.f32.mrb[22].mxu1  ;;  %1494 = vmatprep.mubr.bf16.mxu0 %v1272_v27 }
 0x1ef   : > { %v1095_v47 = vadd.f32 %v1094_v46, %v3081_v33  ;;  %v1096_v48 = vpop.f32.mrb[23].mxu1  ;;  %1495 = vmatmul.mubr.bf16.gmra.mrb[80].mxu0 %v1271_v25  ;;  %v1219_v50 = vmax.f32 %v1091_v43, 0.0 }
 0x1f0   : > { %v1097_v49 = vadd.f32 %v1096_v48, %v3085_v30  ;;  %v1220_v52 = vmax.f32 %v1093_v45, 0.0 }
 0x1f1   : > { %v1221_v51 = vmax.f32 %v1095_v47, 0.0 }
 0x1f2   : > { %v1222_v53 = vmax.f32 %v1097_v49, 0.0 }
 0x1f3   : > { %v1273_v54 = vpack.c.bf16 %v1221_v51, %v1219_v50 }
 0x1f4   : > { %v1274_v55 = vpack.c.bf16 %v1222_v53, %v1220_v52  ;;  %v1100_v56 = vpop.f32.mrb[24].mxu1 }
 0x1f5   : > { %v1101_v57 = vadd.f32 %v1100_v56, %v3081_v33  ;;  %v1102_v58 = vpop.f32.mrb[25].mxu1 }
 0x1f6   : > { %v1103_v59 = vadd.f32 %v1102_v58, %v3085_v30  ;;  %v1104_v60 = vpop.f32.mrb[26].mxu1  ;;  %1502 = vmatprep.mubr.bf16.mxu0 %v1274_v55 }
 0x1f7   : > { %v1105_v61 = vadd.f32 %v1104_v60, %v3081_v33  ;;  %v1106_v62 = vpop.f32.mrb[27].mxu1  ;;  %1503 = vmatmul.mubr.bf16.gmra.mrb[84].mxu0 %v1273_v54  ;;  %v1223_v0 = vmax.f32 %v1101_v57, 0.0 }
 0x1f8   : > { %v1107_v63 = vadd.f32 %v1106_v62, %v3085_v30  ;;  %v1224_v2 = vmax.f32 %v1103_v59, 0.0 }
 0x1f9   : > { %v1225_v1 = vmax.f32 %v1105_v61, 0.0 }
 0x1fa   : > { %v1226_v4 = vmax.f32 %v1107_v63, 0.0 }
 0x1fb   : > { %v1275_v5 = vpack.c.bf16 %v1225_v1, %v1223_v0 }
 0x1fc   : > { %v1276_v6 = vpack.c.bf16 %v1226_v4, %v1224_v2  ;;  %v1110_v7 = vpop.f32.mrb[28].mxu1 }
 0x1fd   : > { %v1111_v8 = vadd.f32 %v1110_v7, %v3081_v33  ;;  %v1112_v9 = vpop.f32.mrb[29].mxu1 }
 0x1fe   : > { %v1113_v10 = vadd.f32 %v1112_v9, %v3085_v30  ;;  %v1114_v11 = vpop.f32.mrb[30].mxu1  ;;  %1510 = vmatprep.mubr.bf16.mxu0 %v1276_v6 }
 0x1ff   : > { %v1115_v12 = vadd.f32 %v1114_v11, %v3081_v33  ;;  %v1116_v13 = vpop.f32.mrb[31].mxu1  ;;  %1511 = vmatmul.mubr.bf16.gmra.mrb[88].mxu0 %v1275_v5  ;;  %v1227_v15 = vmax.f32 %v1111_v8, 0.0 }
 0x200   : > { %v1117_v14 = vadd.f32 %v1116_v13, %v3085_v30  ;;  %v1228_v17 = vmax.f32 %v1113_v10, 0.0 }
 0x201   : > { %v1229_v16 = vmax.f32 %v1115_v12, 0.0 }
 0x202   : > { %v1230_v18 = vmax.f32 %v1117_v14, 0.0 }
 0x203   : > { %v1277_v19 = vpack.c.bf16 %v1229_v16, %v1227_v15  ;;  %v2687_v16 = vld [vmem:[%s3363_s7 + $0x20] sm:$0xff]  }
 0x204   : > { %v1278_v20 = vpack.c.bf16 %v1230_v18, %v1228_v17  ;;  %v1120_v21 = vpop.f32.mrb[32].mxu1  ;;  %2504 = vmatprep.subr.bf16.mxu0 %v2687_v16  ;;  %2596 = vmatprep.subr.bf16.mxu1 %v2687_v16 }
 0x205   : > { %v1121_v22 = vadd.f32 %v1120_v21, %v3081_v33  ;;  %v1122_v23 = vpop.f32.mrb[33].mxu1  ;;  %2505 = vmatpush3.bf16.msra.mxu0 %v2687_v16  ;;  %2604 = vmatpush3.bf16.msra.mxu1 %v2687_v16 }
 0x206   : > { %v1123_v24 = vadd.f32 %v1122_v23, %v3085_v30  ;;  %v1124_v26 = vpop.f32.mrb[34].mxu1  ;;  %1518 = vmatprep.mubr.bf16.mxu0 %v1278_v20 }
 0x207   : > { %v1125_v28 = vadd.f32 %v1124_v26, %v3081_v33  ;;  %v1126_v29 = vpop.f32.mrb[35].mxu1  ;;  %1519 = vmatmul.mubr.bf16.gmra.mrb[92].mxu0 %v1277_v19  ;;  %v1231_v31 = vmax.f32 %v1121_v22, 0.0 }
 0x208   : > { %v1127_v32 = vadd.f32 %v1126_v29, %v3085_v30  ;;  %v1232_v35 = vmax.f32 %v1123_v24, 0.0  ;;  %v2688_v24 = vld [vmem:[%s3363_s7 + $0x28] sm:$0xff]  }
 0x209   : > { %v1233_v34 = vmax.f32 %v1125_v28, 0.0  ;;  %2506 = vmatprep.subr.bf16.mxu0 %v2688_v24  ;;  %2597 = vmatprep.subr.bf16.mxu1 %v2688_v24 }
 0x20a   : > { %v1234_v36 = vmax.f32 %v1127_v32, 0.0  ;;  %2507 = vmatpush3.bf16.msra.mxu0 %v2688_v24  ;;  %2605 = vmatpush3.bf16.msra.mxu1 %v2688_v24 }
 0x20b   : > { %v1279_v37 = vpack.c.bf16 %v1233_v34, %v1231_v31 }
 0x20c   : > { %v1280_v38 = vpack.c.bf16 %v1234_v36, %v1232_v35  ;;  %v1130_v39 = vpop.f32.mrb[36].mxu1  ;;  %v2689_v36 = vld [vmem:[%s3363_s7 + $0x30] sm:$0xff]  }
 0x20d   : > { %v1131_v40 = vadd.f32 %v1130_v39, %v3081_v33  ;;  %v1132_v3 = vpop.f32.mrb[37].mxu1  ;;  %2508 = vmatprep.subr.bf16.mxu0 %v2689_v36  ;;  %2598 = vmatprep.subr.bf16.mxu1 %v2689_v36 }
 0x20e   : > { %v1133_v41 = vadd.f32 %v1132_v3, %v3085_v30  ;;  %v1134_v25 = vpop.f32.mrb[38].mxu1  ;;  %1526 = vmatprep.mubr.bf16.mxu0 %v1280_v38  ;;  %2509 = vmatpush3.bf16.msra.mxu0 %v2689_v36 }
 0x20f   : > { %v1135_v27 = vadd.f32 %v1134_v25, %v3081_v33  ;;  %v1136_v42 = vpop.f32.mrb[39].mxu1  ;;  %1527 = vmatmul.mubr.bf16.gmra.mrb[96].mxu0 %v1279_v37  ;;  %v1235_v44 = vmax.f32 %v1131_v40, 0.0  ;;  %2606 = vmatpush3.bf16.msra.mxu1 %v2689_v36 }
 0x210   : > { %v1137_v43 = vadd.f32 %v1136_v42, %v3085_v30  ;;  %v1236_v46 = vmax.f32 %v1133_v41, 0.0 }
 0x211   : > { %v1237_v45 = vmax.f32 %v1135_v27, 0.0  ;;  %v2690_v27 = vld [vmem:[%s3363_s7 + $0x38] sm:$0xff]  }
 0x212   : > { %v1238_v47 = vmax.f32 %v1137_v43, 0.0  ;;  %2510 = vmatprep.subr.bf16.mxu0 %v2690_v27  ;;  %2599 = vmatprep.subr.bf16.mxu1 %v2690_v27 }
 0x213   : > { %v1281_v48 = vpack.c.bf16 %v1237_v45, %v1235_v44  ;;  %2511 = vmatpush3.bf16.msra.mxu0 %v2690_v27  ;;  %2607 = vmatpush3.bf16.msra.mxu1 %v2690_v27 }
 0x214   : > { %v1282_v49 = vpack.c.bf16 %v1238_v47, %v1236_v46  ;;  %v1140_v50 = vpop.f32.mrb[40].mxu1 }
 0x215   : > { %v1141_v51 = vadd.f32 %v1140_v50, %v3081_v33  ;;  %v1142_v52 = vpop.f32.mrb[41].mxu1 }
 0x216   : > { %v1143_v53 = vadd.f32 %v1142_v52, %v3085_v30  ;;  %v1144_v54 = vpop.f32.mrb[42].mxu1  ;;  %1534 = vmatprep.mubr.bf16.mxu0 %v1282_v49 }
 0x217   : > { %v1145_v55 = vadd.f32 %v1144_v54, %v3081_v33  ;;  %v1146_v56 = vpop.f32.mrb[43].mxu1  ;;  %1535 = vmatmul.mubr.bf16.gmra.mrb[100].mxu0 %v1281_v48  ;;  %v1239_v58 = vmax.f32 %v1141_v51, 0.0 }
 0x218   : > { %v1147_v57 = vadd.f32 %v1146_v56, %v3085_v30  ;;  %v1240_v60 = vmax.f32 %v1143_v53, 0.0 }
 0x219   : > { %v1241_v59 = vmax.f32 %v1145_v55, 0.0 }
 0x21a   : > { %v1242_v61 = vmax.f32 %v1147_v57, 0.0 }
 0x21b   : > { %v1283_v62 = vpack.c.bf16 %v1241_v59, %v1239_v58 }
 0x21c   : > { %v1284_v63 = vpack.c.bf16 %v1242_v61, %v1240_v60  ;;  %v1150_v0 = vpop.f32.mrb[44].mxu1 }
 0x21d   : > { %v1151_v1 = vadd.f32 %v1150_v0, %v3081_v33  ;;  %v1152_v2 = vpop.f32.mrb[45].mxu1 }
 0x21e   : > { %v1153_v4 = vadd.f32 %v1152_v2, %v3085_v30  ;;  %v1154_v5 = vpop.f32.mrb[46].mxu1  ;;  %1542 = vmatprep.mubr.bf16.mxu0 %v1284_v63 }
 0x21f   : > { %v1155_v6 = vadd.f32 %v1154_v5, %v3081_v33  ;;  %v1156_v7 = vpop.f32.mrb[47].mxu1  ;;  %1543 = vmatmul.mubr.bf16.gmra.mrb[104].mxu0 %v1283_v62  ;;  %v1243_v9 = vmax.f32 %v1151_v1, 0.0 }
 0x220   : > { %v1157_v8 = vadd.f32 %v1156_v7, %v3085_v30  ;;  %v1244_v11 = vmax.f32 %v1153_v4, 0.0 }
 0x221   : > { %v1245_v10 = vmax.f32 %v1155_v6, 0.0 }
 0x222   : > { %v1246_v12 = vmax.f32 %v1157_v8, 0.0 }
 0x223   : > { %v1285_v13 = vpack.c.bf16 %v1245_v10, %v1243_v9 }
 0x224   : > { %v1286_v14 = vpack.c.bf16 %v1246_v12, %v1244_v11  ;;  %v1160_v15 = vpop.f32.mrb[48].mxu1 }
 0x225   : > { %v1161_v17 = vadd.f32 %v1160_v15, %v3081_v33  ;;  %v1162_v18 = vpop.f32.mrb[49].mxu1 }
 0x226   : > { %v1163_v19 = vadd.f32 %v1162_v18, %v3085_v30  ;;  %v1164_v20 = vpop.f32.mrb[50].mxu1  ;;  %1550 = vmatprep.mubr.bf16.mxu0 %v1286_v14  ;;  %v3178_v14 = vld [vmem:[%s3362_s6] ss:$0 sm:$0xff] }
 0x227   : > { %v1165_v21 = vadd.f32 %v1164_v20, %v3081_v33  ;;  %v1166_v22 = vpop.f32.mrb[51].mxu1  ;;  %1551 = vmatmul.mubr.bf16.gmra.mrb[108].mxu0 %v1285_v13  ;;  %v1247_v26 = vmax.f32 %v1161_v17, 0.0 }
 0x228   : > { %v1167_v23 = vadd.f32 %v1166_v22, %v3085_v30  ;;  %v1248_v29 = vmax.f32 %v1163_v19, 0.0  ;;  %v3184_v19 = vld [vmem:[%s3365_s9] sm:$0xff]  }
 0x229   : > { %v1249_v28 = vmax.f32 %v1165_v21, 0.0  ;;  %2544 = vmatprep.subr.bf16.mxu1 %v3184_v19 }
 0x22a   : > { %v1250_v32 = vmax.f32 %v1167_v23, 0.0 }
 0x22b   : > { %v1287_v31 = vpack.c.bf16 %v1249_v28, %v1247_v26 }
 0x22c   : > { %v1288_v34 = vpack.c.bf16 %v1250_v32, %v1248_v29  ;;  %v1170_v35 = vpop.f32.mrb[52].mxu1 }
 0x22d   : > { %v1171_v37 = vadd.f32 %v1170_v35, %v3081_v33  ;;  %v1172_v38 = vpop.f32.mrb[53].mxu1 }
 0x22e   : > { %v1173_v39 = vadd.f32 %v1172_v38, %v3085_v30  ;;  %v1174_v40 = vpop.f32.mrb[54].mxu1  ;;  %1558 = vmatprep.mubr.bf16.mxu0 %v1288_v34 }
 0x22f   : > { %v1175_v3 = vadd.f32 %v1174_v40, %v3081_v33  ;;  %v1176_v41 = vpop.f32.mrb[55].mxu1  ;;  %1559 = vmatmul.mubr.bf16.gmra.mrb[112].mxu0 %v1287_v31  ;;  %v1251_v42 = vmax.f32 %v1171_v37, 0.0 }
 0x230   : > { %v1177_v25 = vadd.f32 %v1176_v41, %v3085_v30  ;;  %v1252_v44 = vmax.f32 %v1173_v39, 0.0 }
 0x231   : > { %v1253_v43 = vmax.f32 %v1175_v3, 0.0 }
 0x232   : > { %v1254_v45 = vmax.f32 %v1177_v25, 0.0 }
 0x233   : > { %v1289_v46 = vpack.c.bf16 %v1253_v43, %v1251_v42 }
 0x234   : > { %v1290_v47 = vpack.c.bf16 %v1254_v45, %v1252_v44  ;;  %v1180_v48 = vpop.f32.mrb[56].mxu1 }
 0x235   : > { %v1181_v49 = vadd.f32 %v1180_v48, %v3081_v33  ;;  %v1182_v50 = vpop.f32.mrb[57].mxu1 }
 0x236   : > { %v1183_v51 = vadd.f32 %v1182_v50, %v3085_v30  ;;  %v1184_v52 = vpop.f32.mrb[58].mxu1  ;;  %1566 = vmatprep.mubr.bf16.mxu0 %v1290_v47 }
 0x237   : > { %v1185_v53 = vadd.f32 %v1184_v52, %v3081_v33  ;;  %v1186_v54 = vpop.f32.mrb[59].mxu1  ;;  %1567 = vmatmul.mubr.bf16.gmra.mrb[116].mxu0 %v1289_v46  ;;  %v1255_v56 = vmax.f32 %v1181_v49, 0.0 }
 0x238   : > { %v1187_v55 = vadd.f32 %v1186_v54, %v3085_v30  ;;  %v1256_v58 = vmax.f32 %v1183_v51, 0.0 }
 0x239   : > { %v1257_v57 = vmax.f32 %v1185_v53, 0.0 }
 0x23a   : > { %v1258_v59 = vmax.f32 %v1187_v55, 0.0 }
 0x23b   : > { %v1291_v60 = vpack.c.bf16 %v1257_v57, %v1255_v56 }
 0x23c   : > { %v1292_v61 = vpack.c.bf16 %v1258_v59, %v1256_v58  ;;  %v1190_v62 = vpop.f32.mrb[60].mxu1 }
 0x23d   : > { %v1191_v63 = vadd.f32 %v1190_v62, %v3081_v33  ;;  %v1192_v0 = vpop.f32.mrb[61].mxu1 }
 0x23e   : > { %v1193_v1 = vadd.f32 %v1192_v0, %v3085_v30  ;;  %v1194_v2 = vpop.f32.mrb[62].mxu1  ;;  %1574 = vmatprep.mubr.bf16.mxu0 %v1292_v61 }
 0x23f   : > { %v1195_v4 = vadd.f32 %v1194_v2, %v3081_v33  ;;  %v1196_v5 = vpop.f32.mrb[63].mxu1  ;;  %1575 = vmatmul.mubr.bf16.gmra.mrb[120].mxu0 %v1291_v60  ;;  %v1259_v7 = vmax.f32 %v1191_v63, 0.0 }
 0x240   : > { %v1197_v6 = vadd.f32 %v1196_v5, %v3085_v30  ;;  %v1260_v9 = vmax.f32 %v1193_v1, 0.0 }
 0x241   : > { %v1261_v8 = vmax.f32 %v1195_v4, 0.0 }
 0x242   : > { %v1262_v10 = vmax.f32 %v1197_v6, 0.0 }
 0x243   : > { %v1293_v11 = vpack.c.bf16 %v1261_v8, %v1259_v7 }
 0x244   : > { %v1294_v12 = vpack.c.bf16 %v1262_v10, %v1260_v9 }
 0x246   : > { %1582 = vmatprep.mubr.bf16.mxu0 %v1294_v12 }
 0x247   : > { %1583 = vmatmul.mubr.bf16.gmra.mrb[124].mxu0 %v1293_v11 }
 0x2a2   : > { %v2352_v13 = vpop.f32.mrb[64].mxu0 }
 0x2a3   : > { %v2353_v15 = vpop.f32.mrb[65].mxu0 }
 0x2a4   : > { %v2354_v33 = vadd.f32 %v2353_v15, %v2352_v13  ;;  %v2355_v16 = vpop.f32.mrb[66].mxu0 }
 0x2a5   : > { %v2356_v17 = vpop.f32.mrb[67].mxu0 }
 0x2a6   : > { %v1465_v30 = vadd.f32 %v2354_v33, %v3178_v14  ;;  %v2357_v18 = vadd.f32 %v2356_v17, %v2355_v16 }
 0x2a8   : > { %v1468_v20 = vadd.f32 %v2357_v18, %v3178_v14  ;;  %v1591_v21 = vmax.f32 %v1465_v30, 0.0 }
 0x2aa   : > { %v1592_v22 = vmax.f32 %v1468_v20, 0.0  ;;  %v2358_v23 = vpop.f32.mrb[68].mxu0 }
 0x2ab   : > { %v2359_v24 = vpop.f32.mrb[69].mxu0 }
 0x2ac   : > { %v2360_v26 = vadd.f32 %v2359_v24, %v2358_v23  ;;  %v2361_v28 = vpop.f32.mrb[70].mxu0  ;;  %v1623_v29 = vpack.c.bf16 %v1592_v22, %v1591_v21 }
 0x2ad   : > { %v2362_v32 = vpop.f32.mrb[71].mxu0 }
 0x2ae   : > { %v1473_v31 = vadd.f32 %v2360_v26, %v3178_v14  ;;  %v2363_v34 = vadd.f32 %v2362_v32, %v2361_v28  ;;  %2512 = vmatprep.mubr.bf16.mxu0 %v1623_v29 }
 0x2b0   : > { %v1476_v35 = vadd.f32 %v2363_v34, %v3178_v14  ;;  %v1593_v36 = vmax.f32 %v1473_v31, 0.0 }
 0x2b2   : > { %v1594_v37 = vmax.f32 %v1476_v35, 0.0  ;;  %v2364_v38 = vpop.f32.mrb[72].mxu0 }
 0x2b3   : > { %v2365_v39 = vpop.f32.mrb[73].mxu0 }
 0x2b4   : > { %v1624_v40 = vpack.c.bf16 %v1594_v37, %v1593_v36  ;;  %v2366_v3 = vadd.f32 %v2365_v39, %v2364_v38  ;;  %v2367_v41 = vpop.f32.mrb[74].mxu0 }
 0x2b5   : > { %v2368_v25 = vpop.f32.mrb[75].mxu0 }
 0x2b6   : > { %v1481_v27 = vadd.f32 %v2366_v3, %v3178_v14  ;;  %v2369_v42 = vadd.f32 %v2368_v25, %v2367_v41  ;;  %2513 = vmatmul.mubr.bf16.vlgmr.msra.gmra.mrb[128].mxu0 %v1624_v40 }
 0x2b8   : > { %v1484_v43 = vadd.f32 %v2369_v42, %v3178_v14  ;;  %v1595_v44 = vmax.f32 %v1481_v27, 0.0 }
 0x2ba   : > { %v1596_v45 = vmax.f32 %v1484_v43, 0.0  ;;  %v2370_v46 = vpop.f32.mrb[76].mxu0 }
 0x2bb   : > { %v2371_v47 = vpop.f32.mrb[77].mxu0 }
 0x2bc   : > { %v2372_v48 = vadd.f32 %v2371_v47, %v2370_v46  ;;  %v2373_v49 = vpop.f32.mrb[78].mxu0  ;;  %v1625_v50 = vpack.c.bf16 %v1596_v45, %v1595_v44 }
 0x2bd   : > { %v2374_v51 = vpop.f32.mrb[79].mxu0 }
 0x2be   : > { %v1489_v52 = vadd.f32 %v2372_v48, %v3178_v14  ;;  %v2375_v53 = vadd.f32 %v2374_v51, %v2373_v49  ;;  %2516 = vmatprep.mubr.bf16.mxu0 %v1625_v50 }
 0x2c0   : > { %v1492_v54 = vadd.f32 %v2375_v53, %v3178_v14  ;;  %v1597_v55 = vmax.f32 %v1489_v52, 0.0 }
 0x2c2   : > { %v1598_v56 = vmax.f32 %v1492_v54, 0.0  ;;  %v2376_v57 = vpop.f32.mrb[80].mxu0 }
 0x2c3   : > { %v2377_v58 = vpop.f32.mrb[81].mxu0 }
 0x2c4   : > { %v2378_v59 = vadd.f32 %v2377_v58, %v2376_v57  ;;  %v2379_v60 = vpop.f32.mrb[82].mxu0  ;;  %v1626_v61 = vpack.c.bf16 %v1598_v56, %v1597_v55 }
 0x2c5   : > { %v2380_v62 = vpop.f32.mrb[83].mxu0 }
 0x2c6   : > { %v1497_v63 = vadd.f32 %v2378_v59, %v3178_v14  ;;  %v2381_v0 = vadd.f32 %v2380_v62, %v2379_v60  ;;  %2517 = vmatmul.mubr.bf16.gmra.mrb[132].mxu0 %v1626_v61 }
 0x2c8   : > { %v1500_v1 = vadd.f32 %v2381_v0, %v3178_v14  ;;  %v1599_v2 = vmax.f32 %v1497_v63, 0.0 }
 0x2ca   : > { %v1600_v4 = vmax.f32 %v1500_v1, 0.0  ;;  %v2382_v5 = vpop.f32.mrb[84].mxu0 }
 0x2cb   : > { %v2383_v6 = vpop.f32.mrb[85].mxu0 }
 0x2cc   : > { %v2384_v7 = vadd.f32 %v2383_v6, %v2382_v5  ;;  %v2385_v8 = vpop.f32.mrb[86].mxu0  ;;  %v1627_v9 = vpack.c.bf16 %v1600_v4, %v1599_v2  ;;  %v2692_v2 = vld [vmem:[%s3365_s9 + $0x8] sm:$0xff]  }
 0x2cd   : > { %v2386_v10 = vpop.f32.mrb[87].mxu0 }
 0x2ce   : > { %v1505_v11 = vadd.f32 %v2384_v7, %v3178_v14  ;;  %v2387_v12 = vadd.f32 %v2386_v10, %v2385_v8  ;;  %2520 = vmatprep.mubr.bf16.mxu0 %v1627_v9  ;;  %v2693_v8 = vld [vmem:[%s3365_s9 + $0x10] sm:$0xff]  }
 0x2d0   : > { %v1508_v13 = vadd.f32 %v2387_v12, %v3178_v14  ;;  %v1601_v15 = vmax.f32 %v1505_v11, 0.0 }
 0x2d2   : > { %v1602_v33 = vmax.f32 %v1508_v13, 0.0  ;;  %v2388_v16 = vpop.f32.mrb[88].mxu0 }
 0x2d3   : > { %v2389_v17 = vpop.f32.mrb[89].mxu0 }
 0x2d4   : > { %v2390_v30 = vadd.f32 %v2389_v17, %v2388_v16  ;;  %v2391_v18 = vpop.f32.mrb[90].mxu0  ;;  %v1628_v20 = vpack.c.bf16 %v1602_v33, %v1601_v15 }
 0x2d5   : > { %v2392_v21 = vpop.f32.mrb[91].mxu0 }
 0x2d6   : > { %v1513_v22 = vadd.f32 %v2390_v30, %v3178_v14  ;;  %v2393_v23 = vadd.f32 %v2392_v21, %v2391_v18  ;;  %2521 = vmatmul.mubr.bf16.gmra.mrb[136].mxu0 %v1628_v20  ;;  %v2695_v20 = vld [vmem:[%s3365_s9 + $0x20] sm:$0xff]  }
 0x2d8   : > { %v1516_v24 = vadd.f32 %v2393_v23, %v3178_v14  ;;  %v1603_v26 = vmax.f32 %v1513_v22, 0.0 }
 0x2da   : > { %v1604_v28 = vmax.f32 %v1516_v24, 0.0  ;;  %v2394_v29 = vpop.f32.mrb[92].mxu0 }
 0x2db   : > { %v2395_v32 = vpop.f32.mrb[93].mxu0 }
 0x2dc   : > { %v2396_v31 = vadd.f32 %v2395_v32, %v2394_v29  ;;  %v2397_v34 = vpop.f32.mrb[94].mxu0  ;;  %v1629_v35 = vpack.c.bf16 %v1604_v28, %v1603_v26  ;;  %v2696_v32 = vld [vmem:[%s3365_s9 + $0x28] sm:$0xff]  }
 0x2dd   : > { %v2398_v36 = vpop.f32.mrb[95].mxu0 }
 0x2de   : > { %v1521_v37 = vadd.f32 %v2396_v31, %v3178_v14  ;;  %v2399_v38 = vadd.f32 %v2398_v36, %v2397_v34  ;;  %2524 = vmatprep.mubr.bf16.mxu0 %v1629_v35 }
 0x2e0   : > { %v1524_v39 = vadd.f32 %v2399_v38, %v3178_v14  ;;  %v1605_v40 = vmax.f32 %v1521_v37, 0.0 }
 0x2e2   : > { %v1606_v3 = vmax.f32 %v1524_v39, 0.0  ;;  %v2400_v41 = vpop.f32.mrb[96].mxu0 }
 0x2e3   : > { %v2401_v25 = vpop.f32.mrb[97].mxu0 }
 0x2e4   : > { %v2402_v27 = vadd.f32 %v2401_v25, %v2400_v41  ;;  %v2403_v42 = vpop.f32.mrb[98].mxu0  ;;  %v1630_v43 = vpack.c.bf16 %v1606_v3, %v1605_v40  ;;  %v2697_v40 = vld [vmem:[%s3365_s9 + $0x30] sm:$0xff]  }
 0x2e5   : > { %v2404_v44 = vpop.f32.mrb[99].mxu0 }
 0x2e6   : > { %v1529_v45 = vadd.f32 %v2402_v27, %v3178_v14  ;;  %v2405_v46 = vadd.f32 %v2404_v44, %v2403_v42  ;;  %2525 = vmatmul.mubr.bf16.gmra.mrb[140].mxu0 %v1630_v43 }
 0x2e8   : > { %v1532_v47 = vadd.f32 %v2405_v46, %v3178_v14  ;;  %v1607_v48 = vmax.f32 %v1529_v45, 0.0  ;;  %v2698_v45 = vld [vmem:[%s3365_s9 + $0x38] sm:$0xff]  }
 0x2ea   : > { %v1608_v49 = vmax.f32 %v1532_v47, 0.0  ;;  %v2406_v50 = vpop.f32.mrb[100].mxu0 }
 0x2eb   : > { %v2407_v51 = vpop.f32.mrb[101].mxu0 }
 0x2ec   : > { %v2408_v52 = vadd.f32 %v2407_v51, %v2406_v50  ;;  %v2409_v53 = vpop.f32.mrb[102].mxu0  ;;  %v1631_v54 = vpack.c.bf16 %v1608_v49, %v1607_v48 }
 0x2ed   : > { %v2410_v55 = vpop.f32.mrb[103].mxu0 }
 0x2ee   : > { %v1537_v56 = vadd.f32 %v2408_v52, %v3178_v14  ;;  %v2411_v57 = vadd.f32 %v2410_v55, %v2409_v53  ;;  %2528 = vmatprep.mubr.bf16.mxu1 %v1631_v54 }
 0x2f0   : > { %v1540_v58 = vadd.f32 %v2411_v57, %v3178_v14  ;;  %v1609_v59 = vmax.f32 %v1537_v56, 0.0 }
 0x2f2   : > { %v1610_v60 = vmax.f32 %v1540_v58, 0.0  ;;  %v2412_v61 = vpop.f32.mrb[104].mxu0 }
 0x2f3   : > { %v2413_v62 = vpop.f32.mrb[105].mxu0 }
 0x2f4   : > { %v1632_v63 = vpack.c.bf16 %v1610_v60, %v1609_v59  ;;  %v2414_v0 = vadd.f32 %v2413_v62, %v2412_v61  ;;  %v2415_v1 = vpop.f32.mrb[106].mxu0 }
 0x2f5   : > { %v2416_v4 = vpop.f32.mrb[107].mxu0 }
 0x2f6   : > { %v1545_v5 = vadd.f32 %v2414_v0, %v3178_v14  ;;  %v2417_v6 = vadd.f32 %v2416_v4, %v2415_v1  ;;  %2529 = vmatmul.mubr.bf16.vlgmr.msra.gmra.mrb[64].mxu1 %v1632_v63 }
 0x2f7   : > { %2545 = vmatpush3.bf16.msra.mxu1 %v3184_v19  ;;  %v2694_v19 = vld [vmem:[%s3365_s9 + $0x18] sm:$0xff]  }
 0x2f8   : > { %v1548_v7 = vadd.f32 %v2417_v6, %v3178_v14  ;;  %2546 = vmatprep.subr.bf16.mxu1 %v2692_v2  ;;  %v1611_v9 = vmax.f32 %v1545_v5, 0.0 }
 0x2fa   : > { %v1612_v10 = vmax.f32 %v1548_v7, 0.0  ;;  %v2418_v11 = vpop.f32.mrb[108].mxu0 }
 0x2fb   : > { %v2419_v12 = vpop.f32.mrb[109].mxu0  ;;  %2547 = vmatpush3.bf16.msra.mxu1 %v2692_v2 }
 0x2fc   : > { %v2420_v13 = vadd.f32 %v2419_v12, %v2418_v11  ;;  %v2421_v15 = vpop.f32.mrb[110].mxu0  ;;  %v1633_v33 = vpack.c.bf16 %v1612_v10, %v1611_v9  ;;  %2548 = vmatprep.subr.bf16.mxu1 %v2693_v8  ;;  %v3243_v9 = vld [vmem:[%s3364_s8] ss:$0 sm:$0xff] }
 0x2fd   : > { %v2422_v16 = vpop.f32.mrb[111].mxu0 }
 0x2fe   : > { %v1553_v17 = vadd.f32 %v2420_v13, %v3178_v14  ;;  %v2423_v30 = vadd.f32 %v2422_v16, %v2421_v15  ;;  %2532 = vmatprep.mubr.bf16.mxu1 %v1633_v33 }
 0x2ff   : > { %2549 = vmatpush3.bf16.msra.mxu1 %v2693_v8 }
 0x300   : > { %v1556_v18 = vadd.f32 %v2423_v30, %v3178_v14  ;;  %2550 = vmatprep.subr.bf16.mxu1 %v2694_v19  ;;  %v1613_v21 = vmax.f32 %v1553_v17, 0.0 }
 0x302   : > { %v1614_v22 = vmax.f32 %v1556_v18, 0.0  ;;  %v2424_v23 = vpop.f32.mrb[112].mxu0 }
 0x303   : > { %v2425_v24 = vpop.f32.mrb[113].mxu0  ;;  %2551 = vmatpush3.bf16.msra.mxu1 %v2694_v19 }
 0x304   : > { %v2426_v26 = vadd.f32 %v2425_v24, %v2424_v23  ;;  %v2427_v28 = vpop.f32.mrb[114].mxu0  ;;  %v1634_v29 = vpack.c.bf16 %v1614_v22, %v1613_v21  ;;  %2552 = vmatprep.subr.bf16.mxu1 %v2695_v20 }
 0x305   : > { %v2428_v31 = vpop.f32.mrb[115].mxu0 }
 0x306   : > { %v1561_v34 = vadd.f32 %v2426_v26, %v3178_v14  ;;  %v2429_v35 = vadd.f32 %v2428_v31, %v2427_v28  ;;  %2533 = vmatmul.mubr.bf16.gmra.mrb[68].mxu1 %v1634_v29 }
 0x307   : > { %2553 = vmatpush3.bf16.msra.mxu1 %v2695_v20 }
 0x308   : > { %v1564_v36 = vadd.f32 %v2429_v35, %v3178_v14  ;;  %2554 = vmatprep.subr.bf16.mxu1 %v2696_v32  ;;  %v1615_v37 = vmax.f32 %v1561_v34, 0.0 }
 0x30a   : > { %v1616_v38 = vmax.f32 %v1564_v36, 0.0  ;;  %v2430_v39 = vpop.f32.mrb[116].mxu0 }
 0x30b   : > { %v2431_v3 = vpop.f32.mrb[117].mxu0  ;;  %2555 = vmatpush3.bf16.msra.mxu1 %v2696_v32 }
 0x30c   : > { %v2432_v41 = vadd.f32 %v2431_v3, %v2430_v39  ;;  %v2433_v25 = vpop.f32.mrb[118].mxu0  ;;  %v1635_v27 = vpack.c.bf16 %v1616_v38, %v1615_v37  ;;  %2556 = vmatprep.subr.bf16.mxu1 %v2697_v40 }
 0x30d   : > { %v2434_v42 = vpop.f32.mrb[119].mxu0 }
 0x30e   : > { %v1569_v43 = vadd.f32 %v2432_v41, %v3178_v14  ;;  %v2435_v44 = vadd.f32 %v2434_v42, %v2433_v25  ;;  %2536 = vmatprep.mubr.bf16.mxu1 %v1635_v27 }
 0x30f   : > { %2557 = vmatpush3.bf16.msra.mxu1 %v2697_v40 }
 0x310   : > { %v1572_v46 = vadd.f32 %v2435_v44, %v3178_v14  ;;  %2558 = vmatprep.subr.bf16.mxu1 %v2698_v45  ;;  %v1617_v47 = vmax.f32 %v1569_v43, 0.0 }
 0x312   : > { %v1618_v48 = vmax.f32 %v1572_v46, 0.0  ;;  %v2436_v49 = vpop.f32.mrb[120].mxu0 }
 0x313   : > { %v2437_v50 = vpop.f32.mrb[121].mxu0  ;;  %2559 = vmatpush3.bf16.msra.mxu1 %v2698_v45 }
 0x314   : > { %v2438_v51 = vadd.f32 %v2437_v50, %v2436_v49  ;;  %v2439_v52 = vpop.f32.mrb[122].mxu0  ;;  %v1636_v53 = vpack.c.bf16 %v1618_v48, %v1617_v47 }
 0x315   : > { %v2440_v54 = vpop.f32.mrb[123].mxu0 }
 0x316   : > { %v1577_v55 = vadd.f32 %v2438_v51, %v3178_v14  ;;  %v2441_v56 = vadd.f32 %v2440_v54, %v2439_v52  ;;  %2537 = vmatmul.mubr.bf16.gmra.mrb[72].mxu1 %v1636_v53 }
 0x318   : > { %v1580_v57 = vadd.f32 %v2441_v56, %v3178_v14  ;;  %v1619_v58 = vmax.f32 %v1577_v55, 0.0 }
 0x31a   : > { %v1620_v59 = vmax.f32 %v1580_v57, 0.0  ;;  %v2442_v60 = vpop.f32.mrb[124].mxu0 }
 0x31b   : > { %v2443_v61 = vpop.f32.mrb[125].mxu0 }
 0x31c   : > { %v2444_v62 = vadd.f32 %v2443_v61, %v2442_v60  ;;  %v2445_v63 = vpop.f32.mrb[126].mxu0  ;;  %v1637_v0 = vpack.c.bf16 %v1620_v59, %v1619_v58 }
 0x31d   : > { %v2446_v1 = vpop.f32.mrb[127].mxu0 }
 0x31e   : > { %v1585_v2 = vadd.f32 %v2444_v62, %v3178_v14  ;;  %v2447_v4 = vadd.f32 %v2446_v1, %v2445_v63  ;;  %2540 = vmatprep.mubr.bf16.mxu1 %v1637_v0 }
 0x320   : > { %v1588_v5 = vadd.f32 %v2447_v4, %v3178_v14  ;;  %v1621_v6 = vmax.f32 %v1585_v2, 0.0 }
 0x322   : > { %v1622_v7 = vmax.f32 %v1588_v5, 0.0 }
 0x324   : > { %v1638_v8 = vpack.c.bf16 %v1622_v7, %v1621_v6 }
 0x326   : > { %2541 = vmatmul.mubr.bf16.gmra.mrb[76].mxu1 %v1638_v8 }
 0x389   : > { %v2514_v10 = vpop.f32.mrb[128].mxu0 }
 0x38a   : > { %v1753_v11 = vadd.f32 %v2514_v10, %v3243_v9  ;;  %v1744_v12 = vpop.f32.mrb[129].mxu0 }
 0x38b   : > { %v1745_v13 = vadd.f32 %v3243_v9, %v1744_v12  ;;  %v2515_v15 = vpop.f32.mrb[130].mxu0 }
 0x38c   : > { %v1756_v33 = vadd.f32 %v2515_v15, %v3243_v9  ;;  %v1747_v19 = vpop.f32.mrb[131].mxu0  ;;  %v1873_v16 = vmax.f32 %v1753_v11, 0.0 }
 0x38d   : > { %v1748_v14 = vadd.f32 %v3243_v9, %v1747_v19  ;;  %v1871_v30 = vmax.f32 %v1745_v13, 0.0 }
 0x38e   : > { %v1874_v17 = vmax.f32 %v1756_v33, 0.0 }
 0x38f   : > { %v1872_v18 = vmax.f32 %v1748_v14, 0.0 }
 0x390   : > { %v1904_v20 = vpack.c.bf16 %v1874_v17, %v1873_v16 }
 0x391   : > { %v1903_v21 = vpack.c.bf16 %v1872_v18, %v1871_v30 }
 0x393   : > { %2560 = vmatprep.mubr.bf16.mxu1 %v1903_v21 }
 0x394   : > { %2561 = vmatmul.mubr.bf16.vlgmr.msra.gmra.mrb[80].mxu1 %v1904_v20 }
 0x399   : > { %v2518_v22 = vpop.f32.mrb[132].mxu0 }
 0x39a   : > { %v1769_v23 = vadd.f32 %v2518_v22, %v3243_v9  ;;  %v1760_v24 = vpop.f32.mrb[133].mxu0 }
 0x39b   : > { %v1761_v26 = vadd.f32 %v3243_v9, %v1760_v24  ;;  %v2519_v28 = vpop.f32.mrb[134].mxu0 }
 0x39c   : > { %v1772_v29 = vadd.f32 %v2519_v28, %v3243_v9  ;;  %v1763_v32 = vpop.f32.mrb[135].mxu0  ;;  %v1877_v34 = vmax.f32 %v1769_v23, 0.0 }
 0x39d   : > { %v1764_v31 = vadd.f32 %v3243_v9, %v1763_v32  ;;  %v1875_v36 = vmax.f32 %v1761_v26, 0.0 }
 0x39e   : > { %v1878_v35 = vmax.f32 %v1772_v29, 0.0 }
 0x39f   : > { %v1876_v37 = vmax.f32 %v1764_v31, 0.0 }
 0x3a0   : > { %v1906_v38 = vpack.c.bf16 %v1878_v35, %v1877_v34 }
 0x3a1   : > { %v1905_v39 = vpack.c.bf16 %v1876_v37, %v1875_v36 }
 0x3a3   : > { %2564 = vmatprep.mubr.bf16.mxu1 %v1905_v39 }
 0x3a4   : > { %2565 = vmatmul.mubr.bf16.gmra.mrb[84].mxu1 %v1906_v38 }
 0x3a9   : > { %v2522_v40 = vpop.f32.mrb[136].mxu0 }
 0x3aa   : > { %v1785_v3 = vadd.f32 %v2522_v40, %v3243_v9  ;;  %v1776_v41 = vpop.f32.mrb[137].mxu0 }
 0x3ab   : > { %v1777_v25 = vadd.f32 %v3243_v9, %v1776_v41  ;;  %v2523_v27 = vpop.f32.mrb[138].mxu0 }
 0x3ac   : > { %v1788_v42 = vadd.f32 %v2523_v27, %v3243_v9  ;;  %v1779_v43 = vpop.f32.mrb[139].mxu0  ;;  %v1881_v45 = vmax.f32 %v1785_v3, 0.0 }
 0x3ad   : > { %v1780_v44 = vadd.f32 %v3243_v9, %v1779_v43  ;;  %v1879_v47 = vmax.f32 %v1777_v25, 0.0 }
 0x3ae   : > { %v1882_v46 = vmax.f32 %v1788_v42, 0.0 }
 0x3af   : > { %v1880_v48 = vmax.f32 %v1780_v44, 0.0 }
 0x3b0   : > { %v1908_v49 = vpack.c.bf16 %v1882_v46, %v1881_v45 }
 0x3b1   : > { %v1907_v50 = vpack.c.bf16 %v1880_v48, %v1879_v47 }
 0x3b3   : > { %2568 = vmatprep.mubr.bf16.mxu1 %v1907_v50 }
 0x3b4   : > { %2569 = vmatmul.mubr.bf16.gmra.mrb[88].mxu1 %v1908_v49 }
 0x3b9   : > { %v2526_v51 = vpop.f32.mrb[140].mxu0 }
 0x3ba   : > { %v1801_v52 = vadd.f32 %v2526_v51, %v3243_v9  ;;  %v1792_v53 = vpop.f32.mrb[141].mxu0 }
 0x3bb   : > { %v1793_v54 = vadd.f32 %v3243_v9, %v1792_v53  ;;  %v2527_v55 = vpop.f32.mrb[142].mxu0 }
 0x3bc   : > { %v1804_v56 = vadd.f32 %v2527_v55, %v3243_v9  ;;  %v1795_v57 = vpop.f32.mrb[143].mxu0  ;;  %v1885_v59 = vmax.f32 %v1801_v52, 0.0 }
 0x3bd   : > { %v1796_v58 = vadd.f32 %v3243_v9, %v1795_v57  ;;  %v1883_v61 = vmax.f32 %v1793_v54, 0.0 }
 0x3be   : > { %v1886_v60 = vmax.f32 %v1804_v56, 0.0 }
 0x3bf   : > { %v1884_v62 = vmax.f32 %v1796_v58, 0.0  ;;  %v3280_v58 = vld [vmem:[%s3366_s10] ss:$0 sm:$0xff] }
 0x3c0   : > { %v1910_v63 = vpack.c.bf16 %v1886_v60, %v1885_v59 }
 0x3c1   : > { %v1909_v0 = vpack.c.bf16 %v1884_v62, %v1883_v61 }
 0x3c3   : > { %2572 = vmatprep.mubr.bf16.mxu1 %v1909_v0 }
 0x3c4   : > { %2573 = vmatmul.mubr.bf16.gmra.mrb[92].mxu1 %v1910_v63 }
 0x3c9   : > { %v2530_v1 = vpop.f32.mrb[64].mxu1 }
 0x3ca   : > { %v1817_v2 = vadd.f32 %v2530_v1, %v3243_v9  ;;  %v1808_v4 = vpop.f32.mrb[65].mxu1 }
 0x3cb   : > { %v1809_v5 = vadd.f32 %v3243_v9, %v1808_v4  ;;  %v2531_v6 = vpop.f32.mrb[66].mxu1 }
 0x3cc   : > { %v1820_v7 = vadd.f32 %v2531_v6, %v3243_v9  ;;  %v1811_v8 = vpop.f32.mrb[67].mxu1  ;;  %v1889_v11 = vmax.f32 %v1817_v2, 0.0 }
 0x3cd   : > { %v1812_v10 = vadd.f32 %v3243_v9, %v1811_v8  ;;  %v1887_v13 = vmax.f32 %v1809_v5, 0.0 }
 0x3ce   : > { %v1890_v12 = vmax.f32 %v1820_v7, 0.0 }
 0x3cf   : > { %v1888_v15 = vmax.f32 %v1812_v10, 0.0 }
 0x3d0   : > { %v1912_v33 = vpack.c.bf16 %v1890_v12, %v1889_v11 }
 0x3d1   : > { %v1911_v19 = vpack.c.bf16 %v1888_v15, %v1887_v13 }
 0x3d3   : > { %2576 = vmatprep.mubr.bf16.mxu1 %v1911_v19 }
 0x3d4   : > { %2577 = vmatmul.mubr.bf16.gmra.mrb[96].mxu1 %v1912_v33 }
 0x3d9   : > { %v2534_v14 = vpop.f32.mrb[68].mxu1 }
 0x3da   : > { %v1833_v16 = vadd.f32 %v2534_v14, %v3243_v9  ;;  %v1824_v17 = vpop.f32.mrb[69].mxu1 }
 0x3db   : > { %v1825_v30 = vadd.f32 %v3243_v9, %v1824_v17  ;;  %v2535_v18 = vpop.f32.mrb[70].mxu1 }
 0x3dc   : > { %v1836_v20 = vadd.f32 %v2535_v18, %v3243_v9  ;;  %v1827_v21 = vpop.f32.mrb[71].mxu1  ;;  %v1893_v23 = vmax.f32 %v1833_v16, 0.0 }
 0x3dd   : > { %v1828_v22 = vadd.f32 %v3243_v9, %v1827_v21  ;;  %v1891_v26 = vmax.f32 %v1825_v30, 0.0 }
 0x3de   : > { %v1894_v24 = vmax.f32 %v1836_v20, 0.0 }
 0x3df   : > { %v1892_v28 = vmax.f32 %v1828_v22, 0.0 }
 0x3e0   : > { %v1914_v29 = vpack.c.bf16 %v1894_v24, %v1893_v23 }
 0x3e1   : > { %v1913_v32 = vpack.c.bf16 %v1892_v28, %v1891_v26 }
 0x3e3   : > { %2580 = vmatprep.mubr.bf16.mxu1 %v1913_v32 }
 0x3e4   : > { %2581 = vmatmul.mubr.bf16.gmra.mrb[100].mxu1 %v1914_v29 }
 0x3e9   : > { %v2538_v31 = vpop.f32.mrb[72].mxu1 }
 0x3ea   : > { %v1849_v34 = vadd.f32 %v2538_v31, %v3243_v9  ;;  %v1840_v35 = vpop.f32.mrb[73].mxu1 }
 0x3eb   : > { %v1841_v36 = vadd.f32 %v3243_v9, %v1840_v35  ;;  %v2539_v37 = vpop.f32.mrb[74].mxu1 }
 0x3ec   : > { %v1852_v38 = vadd.f32 %v2539_v37, %v3243_v9  ;;  %v1843_v39 = vpop.f32.mrb[75].mxu1  ;;  %v1897_v3 = vmax.f32 %v1849_v34, 0.0 }
 0x3ed   : > { %v1844_v40 = vadd.f32 %v3243_v9, %v1843_v39  ;;  %v1895_v25 = vmax.f32 %v1841_v36, 0.0 }
 0x3ee   : > { %v1898_v41 = vmax.f32 %v1852_v38, 0.0 }
 0x3ef   : > { %v1896_v27 = vmax.f32 %v1844_v40, 0.0 }
 0x3f0   : > { %v1916_v42 = vpack.c.bf16 %v1898_v41, %v1897_v3 }
 0x3f1   : > { %v1915_v43 = vpack.c.bf16 %v1896_v27, %v1895_v25 }
 0x3f3   : > { %2584 = vmatprep.mubr.bf16.mxu1 %v1915_v43 }
 0x3f4   : > { %2585 = vmatmul.mubr.bf16.gmra.mrb[104].mxu1 %v1916_v42 }
 0x3f9   : > { %v2542_v44 = vpop.f32.mrb[76].mxu1 }
 0x3fa   : > { %v1865_v45 = vadd.f32 %v2542_v44, %v3243_v9  ;;  %v1856_v46 = vpop.f32.mrb[77].mxu1 }
 0x3fb   : > { %v1857_v47 = vadd.f32 %v3243_v9, %v1856_v46  ;;  %v2543_v48 = vpop.f32.mrb[78].mxu1 }
 0x3fc   : > { %v1868_v49 = vadd.f32 %v2543_v48, %v3243_v9  ;;  %v1859_v50 = vpop.f32.mrb[79].mxu1  ;;  %v1901_v52 = vmax.f32 %v1865_v45, 0.0 }
 0x3fd   : > { %v1860_v51 = vadd.f32 %v3243_v9, %v1859_v50  ;;  %v1899_v54 = vmax.f32 %v1857_v47, 0.0 }
 0x3fe   : > { %v1902_v53 = vmax.f32 %v1868_v49, 0.0 }
 0x3ff   : > { %v1900_v55 = vmax.f32 %v1860_v51, 0.0 }
 0x400   : > { %v1918_v56 = vpack.c.bf16 %v1902_v53, %v1901_v52 }
 0x401   : > { %v1917_v57 = vpack.c.bf16 %v1900_v55, %v1899_v54 }
 0x403   : > { %2588 = vmatprep.mubr.bf16.mxu1 %v1917_v57 }
 0x404   : > { %2589 = vmatmul.mubr.bf16.gmra.mrb[108].mxu1 %v1918_v56 }
 0x467   : > { %v2562_v9 = vpop.f32.mrb[80].mxu1 }
 0x468   : > { %v2033_v59 = vadd.f32 %v2562_v9, %v3280_v58  ;;  %v2024_v60 = vpop.f32.mrb[81].mxu1 }
 0x469   : > { %v2025_v61 = vadd.f32 %v3280_v58, %v2024_v60  ;;  %v2563_v62 = vpop.f32.mrb[82].mxu1 }
 0x46a   : > { %2153 = vst [vmem:[%s3287_s24 + $0x10] sm:$0xff] %v2033_v59  ;;  %v2036_v63 = vadd.f32 %v2563_v62, %v3280_v58  ;;  %v2027_v0 = vpop.f32.mrb[83].mxu1 }
 0x46b   : > { %2151 = vst [vmem:[%s3287_s24] sm:$0xff] %v2025_v61  ;;  %v2028_v1 = vadd.f32 %v3280_v58, %v2027_v0 }
 0x46c   : > { %2154 = vst [vmem:[%s3287_s24 + $0x18] sm:$0xff] %v2036_v63 }
 0x46d   : > { %2152 = vst [vmem:[%s3287_s24 + $0x8] sm:$0xff] %v2028_v1 }
 0x477   : > { %v2566_v2 = vpop.f32.mrb[84].mxu1 }
 0x478   : > { %v2049_v4 = vadd.f32 %v2566_v2, %v3280_v58  ;;  %v2040_v5 = vpop.f32.mrb[85].mxu1 }
 0x479   : > { %v2041_v6 = vadd.f32 %v3280_v58, %v2040_v5  ;;  %v2567_v7 = vpop.f32.mrb[86].mxu1 }
 0x47a   : > { %2157 = vst [vmem:[%s3287_s24 + $0x30] sm:$0xff] %v2049_v4  ;;  %v2052_v8 = vadd.f32 %v2567_v7, %v3280_v58  ;;  %v2043_v10 = vpop.f32.mrb[87].mxu1 }
 0x47b   : > { %2155 = vst [vmem:[%s3287_s24 + $0x20] sm:$0xff] %v2041_v6  ;;  %v2044_v11 = vadd.f32 %v3280_v58, %v2043_v10 }
 0x47c   : > { %2158 = vst [vmem:[%s3287_s24 + $0x38] sm:$0xff] %v2052_v8 }
 0x47d   : > { %2156 = vst [vmem:[%s3287_s24 + $0x28] sm:$0xff] %v2044_v11 }
 0x487   : > { %v2570_v12 = vpop.f32.mrb[88].mxu1 }
 0x488   : > { %v2065_v13 = vadd.f32 %v2570_v12, %v3280_v58  ;;  %v2056_v15 = vpop.f32.mrb[89].mxu1 }
 0x489   : > { %v2057_v33 = vadd.f32 %v3280_v58, %v2056_v15  ;;  %v2571_v19 = vpop.f32.mrb[90].mxu1 }
 0x48a   : > { %2161 = vst [vmem:[%s3287_s24 + $0x50] sm:$0xff] %v2065_v13  ;;  %v2068_v14 = vadd.f32 %v2571_v19, %v3280_v58  ;;  %v2059_v16 = vpop.f32.mrb[91].mxu1 }
 0x48b   : > { %2159 = vst [vmem:[%s3287_s24 + $0x40] sm:$0xff] %v2057_v33  ;;  %v2060_v17 = vadd.f32 %v3280_v58, %v2059_v16 }
 0x48c   : > { %2162 = vst [vmem:[%s3287_s24 + $0x58] sm:$0xff] %v2068_v14 }
 0x48d   : > { %2160 = vst [vmem:[%s3287_s24 + $0x48] sm:$0xff] %v2060_v17 }
 0x497   : > { %v2574_v30 = vpop.f32.mrb[92].mxu1 }
 0x498   : > { %v2081_v18 = vadd.f32 %v2574_v30, %v3280_v58  ;;  %v2072_v20 = vpop.f32.mrb[93].mxu1 }
 0x499   : > { %v2073_v21 = vadd.f32 %v3280_v58, %v2072_v20  ;;  %v2575_v22 = vpop.f32.mrb[94].mxu1 }
 0x49a   : > { %2165 = vst [vmem:[%s3287_s24 + $0x70] sm:$0xff] %v2081_v18  ;;  %v2084_v23 = vadd.f32 %v2575_v22, %v3280_v58  ;;  %v2075_v24 = vpop.f32.mrb[95].mxu1 }
 0x49b   : > { %2163 = vst [vmem:[%s3287_s24 + $0x60] sm:$0xff] %v2073_v21  ;;  %v2076_v26 = vadd.f32 %v3280_v58, %v2075_v24 }
 0x49c   : > { %2166 = vst [vmem:[%s3287_s24 + $0x78] sm:$0xff] %v2084_v23 }
 0x49d   : > { %2164 = vst [vmem:[%s3287_s24 + $0x68] sm:$0xff] %v2076_v26 }
 0x4a7   : > { %v2578_v28 = vpop.f32.mrb[96].mxu1 }
 0x4a8   : > { %v2097_v29 = vadd.f32 %v2578_v28, %v3280_v58  ;;  %v2088_v32 = vpop.f32.mrb[97].mxu1 }
 0x4a9   : > { %v2089_v31 = vadd.f32 %v3280_v58, %v2088_v32  ;;  %v2579_v34 = vpop.f32.mrb[98].mxu1 }
 0x4aa   : > { %2169 = vst [vmem:[%s3287_s24 + $0x90] sm:$0xff] %v2097_v29  ;;  %v2100_v35 = vadd.f32 %v2579_v34, %v3280_v58  ;;  %v2091_v36 = vpop.f32.mrb[99].mxu1 }
 0x4ab   : > { %2167 = vst [vmem:[%s3287_s24 + $0x80] sm:$0xff] %v2089_v31  ;;  %v2092_v37 = vadd.f32 %v3280_v58, %v2091_v36 }
 0x4ac   : > { %2170 = vst [vmem:[%s3287_s24 + $0x98] sm:$0xff] %v2100_v35 }
 0x4ad   : > { %2168 = vst [vmem:[%s3287_s24 + $0x88] sm:$0xff] %v2092_v37 }
 0x4b7   : > { %v2582_v38 = vpop.f32.mrb[100].mxu1 }
 0x4b8   : > { %v2113_v39 = vadd.f32 %v2582_v38, %v3280_v58  ;;  %v2104_v40 = vpop.f32.mrb[101].mxu1 }
 0x4b9   : > { %v2105_v3 = vadd.f32 %v3280_v58, %v2104_v40  ;;  %v2583_v41 = vpop.f32.mrb[102].mxu1 }
 0x4ba   : > { %2173 = vst [vmem:[%s3287_s24 + $0xb0] sm:$0xff] %v2113_v39  ;;  %v2116_v25 = vadd.f32 %v2583_v41, %v3280_v58  ;;  %v2107_v27 = vpop.f32.mrb[103].mxu1 }
 0x4bb   : > { %2171 = vst [vmem:[%s3287_s24 + $0xa0] sm:$0xff] %v2105_v3  ;;  %v2108_v42 = vadd.f32 %v3280_v58, %v2107_v27 }
 0x4bc   : > { %2174 = vst [vmem:[%s3287_s24 + $0xb8] sm:$0xff] %v2116_v25 }
 0x4bd   : > { %2172 = vst [vmem:[%s3287_s24 + $0xa8] sm:$0xff] %v2108_v42 }
 0x4c7   : > { %v2586_v43 = vpop.f32.mrb[104].mxu1 }
 0x4c8   : > { %v2129_v44 = vadd.f32 %v2586_v43, %v3280_v58  ;;  %v2120_v45 = vpop.f32.mrb[105].mxu1 }
 0x4c9   : > { %v2121_v46 = vadd.f32 %v3280_v58, %v2120_v45  ;;  %v2587_v47 = vpop.f32.mrb[106].mxu1 }
 0x4ca   : > { %2177 = vst [vmem:[%s3287_s24 + $0xd0] sm:$0xff] %v2129_v44  ;;  %v2132_v48 = vadd.f32 %v2587_v47, %v3280_v58  ;;  %v2123_v49 = vpop.f32.mrb[107].mxu1 }
 0x4cb   : > { %2175 = vst [vmem:[%s3287_s24 + $0xc0] sm:$0xff] %v2121_v46  ;;  %v2124_v50 = vadd.f32 %v3280_v58, %v2123_v49 }
 0x4cc   : > { %2178 = vst [vmem:[%s3287_s24 + $0xd8] sm:$0xff] %v2132_v48 }
 0x4cd   : > { %2176 = vst [vmem:[%s3287_s24 + $0xc8] sm:$0xff] %v2124_v50 }
 0x4d7   : > { %v2590_v51 = vpop.f32.mrb[108].mxu1 }
 0x4d8   : > { %v2145_v52 = vadd.f32 %v2590_v51, %v3280_v58  ;;  %v2136_v53 = vpop.f32.mrb[109].mxu1 }
 0x4d9   : > { %v2137_v54 = vadd.f32 %v3280_v58, %v2136_v53  ;;  %v2591_v55 = vpop.f32.mrb[110].mxu1 }
 0x4da   : > { %2181 = vst [vmem:[%s3287_s24 + $0xf0] sm:$0xff] %v2145_v52  ;;  %v2148_v56 = vadd.f32 %v2591_v55, %v3280_v58  ;;  %v2139_v57 = vpop.f32.mrb[111].mxu1 }
 0x4db   : > { %2179 = vst [vmem:[%s3287_s24 + $0xe0] sm:$0xff] %v2137_v54  ;;  %v2140_v9 = vadd.f32 %v3280_v58, %v2139_v57 }
 0x4dc   : > { %2182 = vst [vmem:[%s3287_s24 + $0xf8] sm:$0xff] %v2148_v56 }
 0x4dd   : > { %2180 = vst [vmem:[%s3287_s24 + $0xe8] sm:$0xff] %v2140_v9 }
 0x4de PF: > { %s21_s17 = sadd.s32 1, %s2705_s17  }
 0x4df   : > { %p18_p4 = scmp.ge.s32.totalorder %s21_s17, 4  }
 0x4e1   :  { %20 = sbr.rel (!%p18_p4) target bundleno = 1 (0x1), region = 94 }

</bundles_post_ra>
